<compile_context>
chip_gen: v6e
topology: v6e:2x2x1
jax: 0.10.0
libtpu: 0.0.40
codegen_flags: <defaults>
</compile_context>

<pallas_src>
import functools

import jax
import jax.numpy as jnp
from jax.experimental import pallas as pl
from jax.experimental.pallas import tpu as pltpu

ENCODED_FEATURE_SIZE = 20   # self.encodedFeatureSize
RESERVE_LEN = 200           # self.reserveLengthForDecode (hard-coded in __init__)


def _cdiv(a, b):
    return -(-a // b)


def _vmem_budget_bytes():
    """Generation-aware VMEM budget (v7x: 64 MiB/core, v5e/v6e: 128 MiB)."""
    cap = None
    try:
        info = pltpu.get_tpu_info()
        cap = getattr(info, "vmem_capacity_bytes", None)
    except Exception:
        cap = None
    if not cap or cap <= 0:
        cap = 64 * 1024 * 1024                 # conservative fallback (v7x per-core)
    return int(min(cap // 2, 64 * 1024 * 1024))


def _gru_scan_kernel(chunk, valid_t, has_tail,
                     len_ref, gi_ref, whh_ref, gbias_ref, bhn_ref,
                     out_ref, h_ref):
    """Serial GRU recurrence over one (batch block, time chunk) tile.

    gi_ref   : (chunk, B_blk, 3C) bf16  input-side pre-activations x @ W_ih (no bias)
    whh_ref  : (C, 3C)  f32  fused hidden-to-hidden weights (gate order r|z|n)
    gbias_ref: (1, 3C)  f32  b_ih (+ b_hh for r,z) [+ fused mid-Linear bias, decoder]
    bhn_ref  : (1, C)   f32  b_hh of the n gate (kept separate: scaled by r)
    out_ref  : (chunk, B_blk, C) f32  hidden states (zero-fill applied in wrapper)
    h_ref    : (B_blk, C) scratch     carried hidden state (persists over time chunks)
    """
    C = h_ref.shape[-1]
    B_blk = h_ref.shape[0]

    @pl.when(pl.program_id(1) == 0)
    def _():
        h_ref[...] = jnp.zeros_like(h_ref)

    lengths = len_ref[...]                                       # (B_blk, 1) int32
    whh = whh_ref[...]                                           # (C, 3C) f32
    gbias = jnp.broadcast_to(gbias_ref[...], (B_blk, 3 * C))     # hoisted broadcasts
    bhn = jnp.broadcast_to(bhn_ref[...], (B_blk, C))
    t0 = pl.program_id(1) * chunk

    def step(t, h):
        gt = t0 + t
        gi = gi_ref[t].astype(jnp.float32)                       # bf16 stream -> f32 math
        if has_tail:                                             # static flag (T > reserve)
            gi = jnp.where(gt >= valid_t, 0.0, gi)               # zeroed tail: bias-only input
        gi = gi + gbias
        gh = jnp.dot(h, whh, preferred_element_type=jnp.float32)  # one MXU push / step
        r = jax.nn.sigmoid(gi[:, 0:C] + gh[:, 0:C])
        z = jax.nn.sigmoid(gi[:, C:2 * C] + gh[:, C:2 * C])
        n = jnp.tanh(gi[:, 2 * C:3 * C] + r * (gh[:, 2 * C:3 * C] + bhn))
        h_new = (1.0 - z) * n + z * h
        h = jnp.where(lengths > gt, h_new, h)                    # freeze h at padded steps
        out_ref[t] = h                                           # zero-fill done in wrapper
        return h

    h_ref[...] = jax.lax.fori_loop(0, chunk, step, h_ref[...],
                                   unroll=min(8, chunk))


def _gru_scan(gi_var, len_arr, whh, gbias, bhn, C, *,
              valid_t, total_t, batch_blocks, time_chunk, vmem_budget):
    """GRU recurrence: pipelined over time chunks, parallel over batch blocks."""
    rows, B_pad, threeC = gi_var.shape
    assert rows == valid_t and B_pad % batch_blocks == 0
    B_blk = B_pad // batch_blocks
    has_tail = valid_t < total_t

    # VMEM-aware time-chunk sizing (double-buffered bf16 gi chunk + f32 out chunk).
    row_bytes = B_blk * (threeC * 2 + C * 4)
    fixed = (C * threeC + threeC + C) * 4 + B_blk * (C + 1) * 4 + (2 << 20)
    max_chunk = max(1, (vmem_budget - fixed) // (2 * row_bytes))
    chunk = max(1, min(int(time_chunk), max_chunk, total_t))
    n_t = _cdiv(total_t, chunk)
    chunk = _cdiv(total_t, n_t)          # equalize chunks -> minimal dead serial steps
    t_grid = n_t * chunk

    # Pad the variable part of gi to whole chunks; the constant tail (if any) is
    # synthesized in-kernel and never materialized / streamed through HBM.
    n_gi = _cdiv(valid_t, chunk)
    gi_rows = n_gi * chunk
    if gi_rows != rows:
        gi_var = jnp.pad(gi_var, ((0, gi_rows - rows), (0, 0), (0, 0)))
    gi_last = n_gi - 1

    kernel = functools.partial(_gru_scan_kernel, chunk, valid_t, has_tail)
    out = pl.pallas_call(
        kernel,
        out_shape=jax.ShapeDtypeStruct((t_grid, B_pad, C), jnp.float32),
        grid=(batch_blocks, n_t),
        in_specs=[
            pl.BlockSpec((B_blk, 1), lambda b, t: (b, 0)),                    # lengths
            pl.BlockSpec((chunk, B_blk, threeC),
                         lambda b, t: (jnp.minimum(t, gi_last), b, 0)),       # gi chunk
            # Whole-array VMEM residents: one copy, not double-buffered per step.
            pl.BlockSpec(memory_space=pltpu.MemorySpace.VMEM),                # fused W_hh
            pl.BlockSpec(memory_space=pltpu.MemorySpace.VMEM),                # gate bias
            pl.BlockSpec(memory_space=pltpu.MemorySpace.VMEM),                # b_hh[n]
        ],
        out_specs=pl.BlockSpec((chunk, B_blk, C), lambda b, t: (t, b, 0)),
        scratch_shapes=[pltpu.VMEM((B_blk, C), jnp.float32)],                 # carried h
        compiler_params=pltpu.CompilerParams(
            dimension_semantics=("parallel", "arbitrary"),
            vmem_limit_bytes=vmem_budget),
    )(len_arr, gi_var, whh, gbias, bhn)
    return out[:total_t]


def gru_autoencoder_forward(x_btf, lengths, params, *,
                            time_chunk=256, batch_blocks=1):
    """Equivalent of GruOneDEncodedAutoencoder.forward(to_x, xTimestampSizes).

    batch_blocks: size of the leading "parallel" grid axis; set to 2 on v7x
    (2 TensorCores per chip), keep 1 on single-core v5e / v6e.
    """
    lengths = [int(l) for l in lengths]
    assert lengths == sorted(lengths, reverse=True), \
        "pack_padded_sequence(enforce_sorted=True) requires descending lengths"
    B, T_in, _ = x_btf.shape
    T = max(lengths)                 # pad_packed pads only to the longest sequence
    assert T <= T_in
    x = x_btf[:, :T, :].astype(jnp.float32)

    E = ENCODED_FEATURE_SIZE
    H = params["hidden_size"]
    R = RESERVE_LEN

    # Static slice arithmetic matching PyTorch/Python slicing with clamping.
    lhs_len = min(R, T)
    raw = T - R
    src_start = raw if raw >= 0 else max(T + raw, 0)
    rhs_len = T - src_start
    assert rhs_len == lhs_len, "slice size mismatch (PyTorch would raise here too)"

    # Batch padding so each batch block is a 16-aligned sublane group (bf16 tile).
    bb = max(1, min(int(batch_blocks), B))
    B_blk = _cdiv(B, bb)
    if bb > 1:
        B_blk = _cdiv(B_blk, 16) * 16
    B_pad = B_blk * bb

    len_arr = jnp.zeros((B_pad, 1), jnp.int32)
    len_arr = len_arr.at[:B, 0].set(jnp.asarray(lengths, jnp.int32))
    # pad_packed zero-fill as a static wrapper-side (T, B, 1) mask.
    seq_mask = (jnp.arange(T)[:, None]
                < jnp.asarray(lengths, jnp.int32)[None, :]).astype(jnp.float32)[..., None]

    vmem_budget = _vmem_budget_bytes()

    if B_pad != B:
        x = jnp.pad(x, ((0, B_pad - B), (0, 0), (0, 0)))

    # ---- encoder: hoisted input projection (one big MXU matmul, bf16 stream) ----
    gi_enc = jnp.einsum("btf,fg->tbg", x, params["wih_e"]).astype(jnp.bfloat16)
    enc_out = _gru_scan(gi_enc, len_arr, params["whh_e"], params["gib_e"],
                        params["bhn_e"], E, valid_t=T, total_t=T,
                        batch_blocks=bb, time_chunk=time_chunk,
                        vmem_budget=vmem_budget)                    # (T, B_pad, E)
    enc_out = enc_out[:, :B] * seq_mask                             # pad_packed zero-fill

    # ---- reserve-length surgery (static slice) + mid Linear fused offline into
    #      the decoder input projection; T > R tail handled inside the kernel ----
    shifted = enc_out[src_start:src_start + lhs_len]                # (lhs_len, B, E)
    if B_pad != B:
        shifted = jnp.pad(shifted, ((0, 0), (0, B_pad - B), (0, 0)))
    gi_dec = jnp.einsum("tbe,eg->tbg", shifted,
                        params["w_dec_in"]).astype(jnp.bfloat16)    # (lhs_len, B_pad, 3H)
    h_dec = _gru_scan(gi_dec, len_arr, params["whh_d"], params["gib_dec"],
                      params["bhn_d"], H, valid_t=lhs_len, total_t=T,
                      batch_blocks=bb, time_chunk=time_chunk,
                      vmem_budget=vmem_budget)                      # (T, B_pad, H)
    h_dec = h_dec[:, :B] * seq_mask                                 # pad_packed zero-fill

    # ---- output Linear + Sigmoid as one batched, lane-dense matmul --------------
    y = jax.nn.sigmoid(
        jnp.einsum("tbh,ho->tbo", h_dec, params["wout"]) + params["bout"])
    return jnp.transpose(y, (1, 0, 2))                              # (B, T, O)


def init_params(key, feature_size, hidden_size, output_size):
    """Deterministic params with the exact shapes nn.GRU / nn.Linear would have,
    then fused/transposed into the kernel-friendly layout."""
    E = ENCODED_FEATURE_SIZE
    keys = jax.random.split(key, 12)

    def u(k, shape, bound):
        return jax.random.uniform(k, shape, jnp.float32, -bound, bound)

    ke = 1.0 / (E ** 0.5)
    kh = 1.0 / (hidden_size ** 0.5)

    # PyTorch-layout tensors (gate order r, z, n).
    w_ih_e = u(keys[0], (3 * E, feature_size), ke)   # lstmEncoder.weight_ih_l0
    w_hh_e = u(keys[1], (3 * E, E), ke)              # lstmEncoder.weight_hh_l0
    b_ih_e = u(keys[2], (3 * E,), ke)
    b_hh_e = u(keys[3], (3 * E,), ke)
    w_mid = u(keys[4], (E, E), ke)                   # lstmEncoderForward
    b_mid = u(keys[5], (E,), ke)
    w_ih_d = u(keys[6], (3 * hidden_size, E), kh)    # lstmDecoder.weight_ih_l0
    w_hh_d = u(keys[7], (3 * hidden_size, hidden_size), kh)
    b_ih_d = u(keys[8], (3 * hidden_size,), kh)
    b_hh_d = u(keys[9], (3 * hidden_size,), kh)
    w_out = u(keys[10], (output_size, hidden_size), kh)  # forwardCalculation
    b_out = u(keys[11], (output_size,), kh)

    def fuse(w_ih, w_hh, b_ih, b_hh, h):
        wih = jnp.transpose(w_ih)                    # (in, 3h)  cols r|z|n
        whh = jnp.transpose(w_hh)                    # (h, 3h)
        gib = (b_ih + jnp.concatenate(               # b_ih + b_hh for r,z only
            [b_hh[:2 * h], jnp.zeros((h,), jnp.float32)])).reshape(1, 3 * h)
        bhn = b_hh[2 * h:].reshape(1, h)             # b_hh[n] (scaled by r)
        return wih, whh, gib, bhn

    wih_e, whh_e, gib_e, bhn_e = fuse(w_ih_e, w_hh_e, b_ih_e, b_hh_e, E)
    wih_d, whh_d, gib_d, bhn_d = fuse(w_ih_d, w_hh_d, b_ih_d, b_hh_d, hidden_size)
    wmid = jnp.transpose(w_mid)

    # Fuse the mid Linear into the decoder input projection (offline, exact).
    w_dec_in = wmid @ wih_d                                   # (E, 3H)
    gib_dec = (b_mid @ wih_d).reshape(1, -1) + gib_d          # (1, 3H)

    return dict(
        hidden_size=hidden_size, output_size=output_size,
        wih_e=wih_e, whh_e=whh_e, gib_e=gib_e, bhn_e=bhn_e,
        w_dec_in=w_dec_in, gib_dec=gib_dec,
        whh_d=whh_d, bhn_d=bhn_d,
        wout=jnp.transpose(w_out), bout=b_out,
    )


if __name__ == "__main__":
    key = jax.random.PRNGKey(0)
    k_x, k_p = jax.random.split(key)

    # Small shapes consistent with the module's forward.
    B, T, FEAT = 4, 8, 16       # batch, padded seq length, feature_size
    H, O = 8, 4                 # hidden_size, output_size

    x = jax.random.normal(k_x, (B, T, FEAT), jnp.float32)
    x_timestamp_sizes = [8, 8, 6, 5]   # descending (enforce_sorted=True)

    params = init_params(k_p, FEAT, H, O)

    # batch_blocks=2 exercises the "parallel" batch grid axis (v7x: 2 TensorCores).
    y = gru_autoencoder_forward(x, x_timestamp_sizes, params, batch_blocks=2)
    y = jax.block_until_ready(y)

    assert y.shape == (B, max(x_timestamp_sizes), O)
    assert bool(jnp.all(jnp.isfinite(y)))
    assert bool(jnp.all((y > 0.0) & (y < 1.0)))   # sigmoid output range
    print("KERNEL_OK")
</pallas_src>

<mosaic_0001>
module attributes {stable_mosaic.version = 11 : i64} {
  func.func @_gru_scan_kernel(%arg0: i32, %arg1: i32, %arg2: memref<16x1xi32, #tpu.memory_space<vmem>>, %arg3: memref<8x16x60xbf16, #tpu.memory_space<vmem>>, %arg4: memref<20x60xf32, #tpu.memory_space<vmem>>, %arg5: memref<1x60xf32, #tpu.memory_space<vmem>>, %arg6: memref<1x20xf32, #tpu.memory_space<vmem>>, %arg7: memref<8x16x20xf32, #tpu.memory_space<vmem>>, %arg8: memref<16x20xf32, #tpu.memory_space<vmem>>) attributes {dimension_semantics = [#tpu.dimension_semantics<parallel>, #tpu.dimension_semantics<arbitrary>], iteration_bounds = array<i64: 2, 1>, scalar_prefetch = 0 : i64, scratch_operands = 1 : i64, tpu.core_type = #tpu.core_type<tc>, window_params = [{transform_indices = @transform_0, window_bounds = array<i64: 16, 1>}, {transform_indices = @transform_1, window_bounds = array<i64: 8, 16, 60>}, {pipeline_mode = #tpu.pipeline_mode<synchronous>, transform_indices = @transform_2, window_bounds = array<i64: 20, 60>}, {pipeline_mode = #tpu.pipeline_mode<synchronous>, transform_indices = @transform_3, window_bounds = array<i64: 1, 60>}, {pipeline_mode = #tpu.pipeline_mode<synchronous>, transform_indices = @transform_4, window_bounds = array<i64: 1, 20>}, {transform_indices = @transform_5, window_bounds = array<i64: 8, 16, 20>}]} {
    %c0_i32 = arith.constant 0 : i32
    %0 = arith.cmpi eq, %arg1, %c0_i32 : i32
    %1 = arith.extui %0 : i1 to i32
    %c0_i32_0 = arith.constant 0 : i32
    %2 = arith.cmpi ne, %1, %c0_i32_0 : i32
    scf.if %2 {
      %cst_77 = arith.constant 0.000000e+00 : f32
      %358 = vector.broadcast %cst_77 : f32 to vector<16x20xf32>
      %c0_78 = arith.constant 0 : index
      %c0_79 = arith.constant 0 : index
      %359 = vector.load %arg8[%c0_78, %c0_79] : memref<16x20xf32, #tpu.memory_space<vmem>>, vector<16x20xf32>
      tpu.vector_store %arg8[%c0_78, %c0_79], %358 {strides = array<i32>} : memref<16x20xf32, #tpu.memory_space<vmem>>, vector<16x20xf32>,
    } else {
    }
    %c0 = arith.constant 0 : index
    %c0_1 = arith.constant 0 : index
    %3 = vector.load %arg2[%c0, %c0_1] : memref<16x1xi32, #tpu.memory_space<vmem>>, vector<16x1xi32>
    %c0_2 = arith.constant 0 : index
    %c0_3 = arith.constant 0 : index
    %4 = vector.load %arg4[%c0_2, %c0_3] : memref<20x60xf32, #tpu.memory_space<vmem>>, vector<20x60xf32>
    %c0_4 = arith.constant 0 : index
    %c0_5 = arith.constant 0 : index
    %5 = vector.load %arg5[%c0_4, %c0_5] : memref<1x60xf32, #tpu.memory_space<vmem>>, vector<1x60xf32>
    %6 = vector.shape_cast %5 : vector<1x60xf32> to vector<1x60xf32>
    %7 = vector.broadcast %6 : vector<1x60xf32> to vector<16x60xf32>
    %c0_6 = arith.constant 0 : index
    %c0_7 = arith.constant 0 : index
    %8 = vector.load %arg6[%c0_6, %c0_7] : memref<1x20xf32, #tpu.memory_space<vmem>>, vector<1x20xf32>
    %9 = vector.shape_cast %8 : vector<1x20xf32> to vector<1x20xf32>
    %10 = vector.broadcast %9 : vector<1x20xf32> to vector<16x20xf32>
    %c8_i32 = arith.constant 8 : i32
    %11 = arith.muli %arg1, %c8_i32 : i32
    %c0_8 = arith.constant 0 : index
    %c0_9 = arith.constant 0 : index
    %12 = vector.load %arg8[%c0_8, %c0_9] : memref<16x20xf32, #tpu.memory_space<vmem>>, vector<16x20xf32>
    %c0_i32_10 = arith.constant 0 : i32
    %13 = arith.addi %11, %c0_i32_10 : i32
    %14 = arith.index_cast %c0_i32_10 : i32 to index
    %c0_11 = arith.constant 0 : index
    %c0_12 = arith.constant 0 : index
    %15 = vector.load %arg3[%14, %c0_11, %c0_12] : memref<8x16x60xbf16, #tpu.memory_space<vmem>>, vector<1x16x60xbf16>
    %16 = vector.shape_cast %15 : vector<1x16x60xbf16> to vector<16x60xbf16>
    %17 = arith.extf %16 : vector<16x60xbf16> to vector<16x60xf32>
    %18 = arith.addf %17, %7 : vector<16x60xf32>
    %cst = arith.constant dense<0.000000e+00> : vector<16x60xf32>
    %19 = tpu.matmul %12, %4, %cst {dimension_numbers = #tpu.dot_dimension_numbers<[1], [0], [0], [1], [0, 0, 1, 1], [], []>} : vector<16x20xf32>, vector<20x60xf32>, vector<16x60xf32> -> vector<16x60xf32>
    %20 = vector.extract_strided_slice %18 {offsets = [0, 0], sizes = [16, 20], strides = [1, 1]} : vector<16x60xf32> to vector<16x20xf32>
    %21 = vector.extract_strided_slice %19 {offsets = [0, 0], sizes = [16, 20], strides = [1, 1]} : vector<16x60xf32> to vector<16x20xf32>
    %22 = arith.addf %20, %21 : vector<16x20xf32>
    %23 = arith.negf %22 : vector<16x20xf32>
    %24 = math.exp %23 : vector<16x20xf32>
    %cst_13 = arith.constant 1.000000e+00 : f32
    %25 = vector.broadcast %cst_13 : f32 to vector<16x20xf32>
    %26 = arith.addf %25, %24 : vector<16x20xf32>
    %27 = arith.divf %25, %26 : vector<16x20xf32>
    %28 = vector.extract_strided_slice %18 {offsets = [0, 20], sizes = [16, 20], strides = [1, 1]} : vector<16x60xf32> to vector<16x20xf32>
    %29 = vector.extract_strided_slice %19 {offsets = [0, 20], sizes = [16, 20], strides = [1, 1]} : vector<16x60xf32> to vector<16x20xf32>
    %30 = arith.addf %28, %29 : vector<16x20xf32>
    %31 = arith.negf %30 : vector<16x20xf32>
    %32 = math.exp %31 : vector<16x20xf32>
    %cst_14 = arith.constant 1.000000e+00 : f32
    %33 = vector.broadcast %cst_14 : f32 to vector<16x20xf32>
    %34 = arith.addf %33, %32 : vector<16x20xf32>
    %35 = arith.divf %33, %34 : vector<16x20xf32>
    %36 = vector.extract_strided_slice %18 {offsets = [0, 40], sizes = [16, 20], strides = [1, 1]} : vector<16x60xf32> to vector<16x20xf32>
    %37 = vector.extract_strided_slice %19 {offsets = [0, 40], sizes = [16, 20], strides = [1, 1]} : vector<16x60xf32> to vector<16x20xf32>
    %38 = arith.addf %37, %10 : vector<16x20xf32>
    %39 = arith.mulf %27, %38 : vector<16x20xf32>
    %40 = arith.addf %36, %39 : vector<16x20xf32>
    %41 = math.tanh %40 : vector<16x20xf32>
    %cst_15 = arith.constant 1.000000e+00 : f32
    %42 = vector.broadcast %cst_15 : f32 to vector<16x20xf32>
    %43 = arith.subf %42, %35 : vector<16x20xf32>
    %44 = arith.mulf %43, %41 : vector<16x20xf32>
    %45 = arith.mulf %35, %12 : vector<16x20xf32>
    %46 = arith.addf %44, %45 : vector<16x20xf32>
    %47 = vector.broadcast %13 : i32 to vector<16x1xi32>
    %48 = arith.cmpi sgt, %3, %47 : vector<16x1xi32>
    %49 = vector.shape_cast %48 : vector<16x1xi1> to vector<16x1xi1>
    %50 = vector.broadcast %49 : vector<16x1xi1> to vector<16x20xi1>
    %51 = arith.select %50, %46, %12 : vector<16x20xi1>, vector<16x20xf32>
    %52 = arith.index_cast %c0_i32_10 : i32 to index
    %c0_16 = arith.constant 0 : index
    %c0_17 = arith.constant 0 : index
    %53 = vector.load %arg7[%52, %c0_16, %c0_17] : memref<8x16x20xf32, #tpu.memory_space<vmem>>, vector<1x16x20xf32>
    %54 = vector.shape_cast %53 : vector<1x16x20xf32> to vector<16x20xf32>
    %55 = vector.shape_cast %51 : vector<16x20xf32> to vector<1x16x20xf32>
    tpu.vector_store %arg7[%52, %c0_16, %c0_17], %55 {strides = array<i32>} : memref<8x16x20xf32, #tpu.memory_space<vmem>>, vector<1x16x20xf32>,
    %c1_i32 = arith.constant 1 : i32
    %56 = arith.addi %11, %c1_i32 : i32
    %57 = arith.index_cast %c1_i32 : i32 to index
    %c0_18 = arith.constant 0 : index
    %c0_19 = arith.constant 0 : index
    %58 = vector.load %arg3[%57, %c0_18, %c0_19] : memref<8x16x60xbf16, #tpu.memory_space<vmem>>, vector<1x16x60xbf16>
    %59 = vector.shape_cast %58 : vector<1x16x60xbf16> to vector<16x60xbf16>
    %60 = arith.extf %59 : vector<16x60xbf16> to vector<16x60xf32>
    %61 = arith.addf %60, %7 : vector<16x60xf32>
    %cst_20 = arith.constant dense<0.000000e+00> : vector<16x60xf32>
    %62 = tpu.matmul %51, %4, %cst_20 {dimension_numbers = #tpu.dot_dimension_numbers<[1], [0], [0], [1], [0, 0, 1, 1], [], []>} : vector<16x20xf32>, vector<20x60xf32>, vector<16x60xf32> -> vector<16x60xf32>
    %63 = vector.extract_strided_slice %61 {offsets = [0, 0], sizes = [16, 20], strides = [1, 1]} : vector<16x60xf32> to vector<16x20xf32>
    %64 = vector.extract_strided_slice %62 {offsets = [0, 0], sizes = [16, 20], strides = [1, 1]} : vector<16x60xf32> to vector<16x20xf32>
    %65 = arith.addf %63, %64 : vector<16x20xf32>
    %66 = arith.negf %65 : vector<16x20xf32>
    %67 = math.exp %66 : vector<16x20xf32>
    %cst_21 = arith.constant 1.000000e+00 : f32
    %68 = vector.broadcast %cst_21 : f32 to vector<16x20xf32>
    %69 = arith.addf %68, %67 : vector<16x20xf32>
    %70 = arith.divf %68, %69 : vector<16x20xf32>
    %71 = vector.extract_strided_slice %61 {offsets = [0, 20], sizes = [16, 20], strides = [1, 1]} : vector<16x60xf32> to vector<16x20xf32>
    %72 = vector.extract_strided_slice %62 {offsets = [0, 20], sizes = [16, 20], strides = [1, 1]} : vector<16x60xf32> to vector<16x20xf32>
    %73 = arith.addf %71, %72 : vector<16x20xf32>
    %74 = arith.negf %73 : vector<16x20xf32>
    %75 = math.exp %74 : vector<16x20xf32>
    %cst_22 = arith.constant 1.000000e+00 : f32
    %76 = vector.broadcast %cst_22 : f32 to vector<16x20xf32>
    %77 = arith.addf %76, %75 : vector<16x20xf32>
    %78 = arith.divf %76, %77 : vector<16x20xf32>
    %79 = vector.extract_strided_slice %61 {offsets = [0, 40], sizes = [16, 20], strides = [1, 1]} : vector<16x60xf32> to vector<16x20xf32>
    %80 = vector.extract_strided_slice %62 {offsets = [0, 40], sizes = [16, 20], strides = [1, 1]} : vector<16x60xf32> to vector<16x20xf32>
    %81 = arith.addf %80, %10 : vector<16x20xf32>
    %82 = arith.mulf %70, %81 : vector<16x20xf32>
    %83 = arith.addf %79, %82 : vector<16x20xf32>
    %84 = math.tanh %83 : vector<16x20xf32>
    %cst_23 = arith.constant 1.000000e+00 : f32
    %85 = vector.broadcast %cst_23 : f32 to vector<16x20xf32>
    %86 = arith.subf %85, %78 : vector<16x20xf32>
    %87 = arith.mulf %86, %84 : vector<16x20xf32>
    %88 = arith.mulf %78, %51 : vector<16x20xf32>
    %89 = arith.addf %87, %88 : vector<16x20xf32>
    %90 = vector.broadcast %56 : i32 to vector<16x1xi32>
    %91 = arith.cmpi sgt, %3, %90 : vector<16x1xi32>
    %92 = vector.shape_cast %91 : vector<16x1xi1> to vector<16x1xi1>
    %93 = vector.broadcast %92 : vector<16x1xi1> to vector<16x20xi1>
    %94 = arith.select %93, %89, %51 : vector<16x20xi1>, vector<16x20xf32>
    %95 = arith.index_cast %c1_i32 : i32 to index
    %c0_24 = arith.constant 0 : index
    %c0_25 = arith.constant 0 : index
    %96 = vector.load %arg7[%95, %c0_24, %c0_25] : memref<8x16x20xf32, #tpu.memory_space<vmem>>, vector<1x16x20xf32>
    %97 = vector.shape_cast %96 : vector<1x16x20xf32> to vector<16x20xf32>
    %98 = vector.shape_cast %94 : vector<16x20xf32> to vector<1x16x20xf32>
    tpu.vector_store %arg7[%95, %c0_24, %c0_25], %98 {strides = array<i32>} : memref<8x16x20xf32, #tpu.memory_space<vmem>>, vector<1x16x20xf32>,
    %c2_i32 = arith.constant 2 : i32
    %99 = arith.addi %11, %c2_i32 : i32
    %100 = arith.index_cast %c2_i32 : i32 to index
    %c0_26 = arith.constant 0 : index
    %c0_27 = arith.constant 0 : index
    %101 = vector.load %arg3[%100, %c0_26, %c0_27] : memref<8x16x60xbf16, #tpu.memory_space<vmem>>, vector<1x16x60xbf16>
    %102 = vector.shape_cast %101 : vector<1x16x60xbf16> to vector<16x60xbf16>
    %103 = arith.extf %102 : vector<16x60xbf16> to vector<16x60xf32>
    %104 = arith.addf %103, %7 : vector<16x60xf32>
    %cst_28 = arith.constant dense<0.000000e+00> : vector<16x60xf32>
    %105 = tpu.matmul %94, %4, %cst_28 {dimension_numbers = #tpu.dot_dimension_numbers<[1], [0], [0], [1], [0, 0, 1, 1], [], []>} : vector<16x20xf32>, vector<20x60xf32>, vector<16x60xf32> -> vector<16x60xf32>
    %106 = vector.extract_strided_slice %104 {offsets = [0, 0], sizes = [16, 20], strides = [1, 1]} : vector<16x60xf32> to vector<16x20xf32>
    %107 = vector.extract_strided_slice %105 {offsets = [0, 0], sizes = [16, 20], strides = [1, 1]} : vector<16x60xf32> to vector<16x20xf32>
    %108 = arith.addf %106, %107 : vector<16x20xf32>
    %109 = arith.negf %108 : vector<16x20xf32>
    %110 = math.exp %109 : vector<16x20xf32>
    %cst_29 = arith.constant 1.000000e+00 : f32
    %111 = vector.broadcast %cst_29 : f32 to vector<16x20xf32>
    %112 = arith.addf %111, %110 : vector<16x20xf32>
    %113 = arith.divf %111, %112 : vector<16x20xf32>
    %114 = vector.extract_strided_slice %104 {offsets = [0, 20], sizes = [16, 20], strides = [1, 1]} : vector<16x60xf32> to vector<16x20xf32>
    %115 = vector.extract_strided_slice %105 {offsets = [0, 20], sizes = [16, 20], strides = [1, 1]} : vector<16x60xf32> to vector<16x20xf32>
    %116 = arith.addf %114, %115 : vector<16x20xf32>
    %117 = arith.negf %116 : vector<16x20xf32>
    %118 = math.exp %117 : vector<16x20xf32>
    %cst_30 = arith.constant 1.000000e+00 : f32
    %119 = vector.broadcast %cst_30 : f32 to vector<16x20xf32>
    %120 = arith.addf %119, %118 : vector<16x20xf32>
    %121 = arith.divf %119, %120 : vector<16x20xf32>
    %122 = vector.extract_strided_slice %104 {offsets = [0, 40], sizes = [16, 20], strides = [1, 1]} : vector<16x60xf32> to vector<16x20xf32>
    %123 = vector.extract_strided_slice %105 {offsets = [0, 40], sizes = [16, 20], strides = [1, 1]} : vector<16x60xf32> to vector<16x20xf32>
    %124 = arith.addf %123, %10 : vector<16x20xf32>
    %125 = arith.mulf %113, %124 : vector<16x20xf32>
    %126 = arith.addf %122, %125 : vector<16x20xf32>
    %127 = math.tanh %126 : vector<16x20xf32>
    %cst_31 = arith.constant 1.000000e+00 : f32
    %128 = vector.broadcast %cst_31 : f32 to vector<16x20xf32>
    %129 = arith.subf %128, %121 : vector<16x20xf32>
    %130 = arith.mulf %129, %127 : vector<16x20xf32>
    %131 = arith.mulf %121, %94 : vector<16x20xf32>
    %132 = arith.addf %130, %131 : vector<16x20xf32>
    %133 = vector.broadcast %99 : i32 to vector<16x1xi32>
    %134 = arith.cmpi sgt, %3, %133 : vector<16x1xi32>
    %135 = vector.shape_cast %134 : vector<16x1xi1> to vector<16x1xi1>
    %136 = vector.broadcast %135 : vector<16x1xi1> to vector<16x20xi1>
    %137 = arith.select %136, %132, %94 : vector<16x20xi1>, vector<16x20xf32>
    %138 = arith.index_cast %c2_i32 : i32 to index
    %c0_32 = arith.constant 0 : index
    %c0_33 = arith.constant 0 : index
    %139 = vector.load %arg7[%138, %c0_32, %c0_33] : memref<8x16x20xf32, #tpu.memory_space<vmem>>, vector<1x16x20xf32>
    %140 = vector.shape_cast %139 : vector<1x16x20xf32> to vector<16x20xf32>
    %141 = vector.shape_cast %137 : vector<16x20xf32> to vector<1x16x20xf32>
    tpu.vector_store %arg7[%138, %c0_32, %c0_33], %141 {strides = array<i32>} : memref<8x16x20xf32, #tpu.memory_space<vmem>>, vector<1x16x20xf32>,
    %c3_i32 = arith.constant 3 : i32
    %142 = arith.addi %11, %c3_i32 : i32
    %143 = arith.index_cast %c3_i32 : i32 to index
    %c0_34 = arith.constant 0 : index
    %c0_35 = arith.constant 0 : index
    %144 = vector.load %arg3[%143, %c0_34, %c0_35] : memref<8x16x60xbf16, #tpu.memory_space<vmem>>, vector<1x16x60xbf16>
    %145 = vector.shape_cast %144 : vector<1x16x60xbf16> to vector<16x60xbf16>
    %146 = arith.extf %145 : vector<16x60xbf16> to vector<16x60xf32>
    %147 = arith.addf %146, %7 : vector<16x60xf32>
    %cst_36 = arith.constant dense<0.000000e+00> : vector<16x60xf32>
    %148 = tpu.matmul %137, %4, %cst_36 {dimension_numbers = #tpu.dot_dimension_numbers<[1], [0], [0], [1], [0, 0, 1, 1], [], []>} : vector<16x20xf32>, vector<20x60xf32>, vector<16x60xf32> -> vector<16x60xf32>
    %149 = vector.extract_strided_slice %147 {offsets = [0, 0], sizes = [16, 20], strides = [1, 1]} : vector<16x60xf32> to vector<16x20xf32>
    %150 = vector.extract_strided_slice %148 {offsets = [0, 0], sizes = [16, 20], strides = [1, 1]} : vector<16x60xf32> to vector<16x20xf32>
    %151 = arith.addf %149, %150 : vector<16x20xf32>
    %152 = arith.negf %151 : vector<16x20xf32>
    %153 = math.exp %152 : vector<16x20xf32>
    %cst_37 = arith.constant 1.000000e+00 : f32
    %154 = vector.broadcast %cst_37 : f32 to vector<16x20xf32>
    %155 = arith.addf %154, %153 : vector<16x20xf32>
    %156 = arith.divf %154, %155 : vector<16x20xf32>
    %157 = vector.extract_strided_slice %147 {offsets = [0, 20], sizes = [16, 20], strides = [1, 1]} : vector<16x60xf32> to vector<16x20xf32>
    %158 = vector.extract_strided_slice %148 {offsets = [0, 20], sizes = [16, 20], strides = [1, 1]} : vector<16x60xf32> to vector<16x20xf32>
    %159 = arith.addf %157, %158 : vector<16x20xf32>
    %160 = arith.negf %159 : vector<16x20xf32>
    %161 = math.exp %160 : vector<16x20xf32>
    %cst_38 = arith.constant 1.000000e+00 : f32
    %162 = vector.broadcast %cst_38 : f32 to vector<16x20xf32>
    %163 = arith.addf %162, %161 : vector<16x20xf32>
    %164 = arith.divf %162, %163 : vector<16x20xf32>
    %165 = vector.extract_strided_slice %147 {offsets = [0, 40], sizes = [16, 20], strides = [1, 1]} : vector<16x60xf32> to vector<16x20xf32>
    %166 = vector.extract_strided_slice %148 {offsets = [0, 40], sizes = [16, 20], strides = [1, 1]} : vector<16x60xf32> to vector<16x20xf32>
    %167 = arith.addf %166, %10 : vector<16x20xf32>
    %168 = arith.mulf %156, %167 : vector<16x20xf32>
    %169 = arith.addf %165, %168 : vector<16x20xf32>
    %170 = math.tanh %169 : vector<16x20xf32>
    %cst_39 = arith.constant 1.000000e+00 : f32
    %171 = vector.broadcast %cst_39 : f32 to vector<16x20xf32>
    %172 = arith.subf %171, %164 : vector<16x20xf32>
    %173 = arith.mulf %172, %170 : vector<16x20xf32>
    %174 = arith.mulf %164, %137 : vector<16x20xf32>
    %175 = arith.addf %173, %174 : vector<16x20xf32>
    %176 = vector.broadcast %142 : i32 to vector<16x1xi32>
    %177 = arith.cmpi sgt, %3, %176 : vector<16x1xi32>
    %178 = vector.shape_cast %177 : vector<16x1xi1> to vector<16x1xi1>
    %179 = vector.broadcast %178 : vector<16x1xi1> to vector<16x20xi1>
    %180 = arith.select %179, %175, %137 : vector<16x20xi1>, vector<16x20xf32>
    %181 = arith.index_cast %c3_i32 : i32 to index
    %c0_40 = arith.constant 0 : index
    %c0_41 = arith.constant 0 : index
    %182 = vector.load %arg7[%181, %c0_40, %c0_41] : memref<8x16x20xf32, #tpu.memory_space<vmem>>, vector<1x16x20xf32>
    %183 = vector.shape_cast %182 : vector<1x16x20xf32> to vector<16x20xf32>
    %184 = vector.shape_cast %180 : vector<16x20xf32> to vector<1x16x20xf32>
    tpu.vector_store %arg7[%181, %c0_40, %c0_41], %184 {strides = array<i32>} : memref<8x16x20xf32, #tpu.memory_space<vmem>>, vector<1x16x20xf32>,
    %c4_i32 = arith.constant 4 : i32
    %185 = arith.addi %11, %c4_i32 : i32
    %186 = arith.index_cast %c4_i32 : i32 to index
    %c0_42 = arith.constant 0 : index
    %c0_43 = arith.constant 0 : index
    %187 = vector.load %arg3[%186, %c0_42, %c0_43] : memref<8x16x60xbf16, #tpu.memory_space<vmem>>, vector<1x16x60xbf16>
    %188 = vector.shape_cast %187 : vector<1x16x60xbf16> to vector<16x60xbf16>
    %189 = arith.extf %188 : vector<16x60xbf16> to vector<16x60xf32>
    %190 = arith.addf %189, %7 : vector<16x60xf32>
    %cst_44 = arith.constant dense<0.000000e+00> : vector<16x60xf32>
    %191 = tpu.matmul %180, %4, %cst_44 {dimension_numbers = #tpu.dot_dimension_numbers<[1], [0], [0], [1], [0, 0, 1, 1], [], []>} : vector<16x20xf32>, vector<20x60xf32>, vector<16x60xf32> -> vector<16x60xf32>
    %192 = vector.extract_strided_slice %190 {offsets = [0, 0], sizes = [16, 20], strides = [1, 1]} : vector<16x60xf32> to vector<16x20xf32>
    %193 = vector.extract_strided_slice %191 {offsets = [0, 0], sizes = [16, 20], strides = [1, 1]} : vector<16x60xf32> to vector<16x20xf32>
    %194 = arith.addf %192, %193 : vector<16x20xf32>
    %195 = arith.negf %194 : vector<16x20xf32>
    %196 = math.exp %195 : vector<16x20xf32>
    %cst_45 = arith.constant 1.000000e+00 : f32
    %197 = vector.broadcast %cst_45 : f32 to vector<16x20xf32>
    %198 = arith.addf %197, %196 : vector<16x20xf32>
    %199 = arith.divf %197, %198 : vector<16x20xf32>
    %200 = vector.extract_strided_slice %190 {offsets = [0, 20], sizes = [16, 20], strides = [1, 1]} : vector<16x60xf32> to vector<16x20xf32>
    %201 = vector.extract_strided_slice %191 {offsets = [0, 20], sizes = [16, 20], strides = [1, 1]} : vector<16x60xf32> to vector<16x20xf32>
    %202 = arith.addf %200, %201 : vector<16x20xf32>
    %203 = arith.negf %202 : vector<16x20xf32>
    %204 = math.exp %203 : vector<16x20xf32>
    %cst_46 = arith.constant 1.000000e+00 : f32
    %205 = vector.broadcast %cst_46 : f32 to vector<16x20xf32>
    %206 = arith.addf %205, %204 : vector<16x20xf32>
    %207 = arith.divf %205, %206 : vector<16x20xf32>
    %208 = vector.extract_strided_slice %190 {offsets = [0, 40], sizes = [16, 20], strides = [1, 1]} : vector<16x60xf32> to vector<16x20xf32>
    %209 = vector.extract_strided_slice %191 {offsets = [0, 40], sizes = [16, 20], strides = [1, 1]} : vector<16x60xf32> to vector<16x20xf32>
    %210 = arith.addf %209, %10 : vector<16x20xf32>
    %211 = arith.mulf %199, %210 : vector<16x20xf32>
    %212 = arith.addf %208, %211 : vector<16x20xf32>
    %213 = math.tanh %212 : vector<16x20xf32>
    %cst_47 = arith.constant 1.000000e+00 : f32
    %214 = vector.broadcast %cst_47 : f32 to vector<16x20xf32>
    %215 = arith.subf %214, %207 : vector<16x20xf32>
    %216 = arith.mulf %215, %213 : vector<16x20xf32>
    %217 = arith.mulf %207, %180 : vector<16x20xf32>
    %218 = arith.addf %216, %217 : vector<16x20xf32>
    %219 = vector.broadcast %185 : i32 to vector<16x1xi32>
    %220 = arith.cmpi sgt, %3, %219 : vector<16x1xi32>
    %221 = vector.shape_cast %220 : vector<16x1xi1> to vector<16x1xi1>
    %222 = vector.broadcast %221 : vector<16x1xi1> to vector<16x20xi1>
    %223 = arith.select %222, %218, %180 : vector<16x20xi1>, vector<16x20xf32>
    %224 = arith.index_cast %c4_i32 : i32 to index
    %c0_48 = arith.constant 0 : index
    %c0_49 = arith.constant 0 : index
    %225 = vector.load %arg7[%224, %c0_48, %c0_49] : memref<8x16x20xf32, #tpu.memory_space<vmem>>, vector<1x16x20xf32>
    %226 = vector.shape_cast %225 : vector<1x16x20xf32> to vector<16x20xf32>
    %227 = vector.shape_cast %223 : vector<16x20xf32> to vector<1x16x20xf32>
    tpu.vector_store %arg7[%224, %c0_48, %c0_49], %227 {strides = array<i32>} : memref<8x16x20xf32, #tpu.memory_space<vmem>>, vector<1x16x20xf32>,
    %c5_i32 = arith.constant 5 : i32
    %228 = arith.addi %11, %c5_i32 : i32
    %229 = arith.index_cast %c5_i32 : i32 to index
    %c0_50 = arith.constant 0 : index
    %c0_51 = arith.constant 0 : index
    %230 = vector.load %arg3[%229, %c0_50, %c0_51] : memref<8x16x60xbf16, #tpu.memory_space<vmem>>, vector<1x16x60xbf16>
    %231 = vector.shape_cast %230 : vector<1x16x60xbf16> to vector<16x60xbf16>
    %232 = arith.extf %231 : vector<16x60xbf16> to vector<16x60xf32>
    %233 = arith.addf %232, %7 : vector<16x60xf32>
    %cst_52 = arith.constant dense<0.000000e+00> : vector<16x60xf32>
    %234 = tpu.matmul %223, %4, %cst_52 {dimension_numbers = #tpu.dot_dimension_numbers<[1], [0], [0], [1], [0, 0, 1, 1], [], []>} : vector<16x20xf32>, vector<20x60xf32>, vector<16x60xf32> -> vector<16x60xf32>
    %235 = vector.extract_strided_slice %233 {offsets = [0, 0], sizes = [16, 20], strides = [1, 1]} : vector<16x60xf32> to vector<16x20xf32>
    %236 = vector.extract_strided_slice %234 {offsets = [0, 0], sizes = [16, 20], strides = [1, 1]} : vector<16x60xf32> to vector<16x20xf32>
    %237 = arith.addf %235, %236 : vector<16x20xf32>
    %238 = arith.negf %237 : vector<16x20xf32>
    %239 = math.exp %238 : vector<16x20xf32>
    %cst_53 = arith.constant 1.000000e+00 : f32
    %240 = vector.broadcast %cst_53 : f32 to vector<16x20xf32>
    %241 = arith.addf %240, %239 : vector<16x20xf32>
    %242 = arith.divf %240, %241 : vector<16x20xf32>
    %243 = vector.extract_strided_slice %233 {offsets = [0, 20], sizes = [16, 20], strides = [1, 1]} : vector<16x60xf32> to vector<16x20xf32>
    %244 = vector.extract_strided_slice %234 {offsets = [0, 20], sizes = [16, 20], strides = [1, 1]} : vector<16x60xf32> to vector<16x20xf32>
    %245 = arith.addf %243, %244 : vector<16x20xf32>
    %246 = arith.negf %245 : vector<16x20xf32>
    %247 = math.exp %246 : vector<16x20xf32>
    %cst_54 = arith.constant 1.000000e+00 : f32
    %248 = vector.broadcast %cst_54 : f32 to vector<16x20xf32>
    %249 = arith.addf %248, %247 : vector<16x20xf32>
    %250 = arith.divf %248, %249 : vector<16x20xf32>
    %251 = vector.extract_strided_slice %233 {offsets = [0, 40], sizes = [16, 20], strides = [1, 1]} : vector<16x60xf32> to vector<16x20xf32>
    %252 = vector.extract_strided_slice %234 {offsets = [0, 40], sizes = [16, 20], strides = [1, 1]} : vector<16x60xf32> to vector<16x20xf32>
    %253 = arith.addf %252, %10 : vector<16x20xf32>
    %254 = arith.mulf %242, %253 : vector<16x20xf32>
    %255 = arith.addf %251, %254 : vector<16x20xf32>
    %256 = math.tanh %255 : vector<16x20xf32>
    %cst_55 = arith.constant 1.000000e+00 : f32
    %257 = vector.broadcast %cst_55 : f32 to vector<16x20xf32>
    %258 = arith.subf %257, %250 : vector<16x20xf32>
    %259 = arith.mulf %258, %256 : vector<16x20xf32>
    %260 = arith.mulf %250, %223 : vector<16x20xf32>
    %261 = arith.addf %259, %260 : vector<16x20xf32>
    %262 = vector.broadcast %228 : i32 to vector<16x1xi32>
    %263 = arith.cmpi sgt, %3, %262 : vector<16x1xi32>
    %264 = vector.shape_cast %263 : vector<16x1xi1> to vector<16x1xi1>
    %265 = vector.broadcast %264 : vector<16x1xi1> to vector<16x20xi1>
    %266 = arith.select %265, %261, %223 : vector<16x20xi1>, vector<16x20xf32>
    %267 = arith.index_cast %c5_i32 : i32 to index
    %c0_56 = arith.constant 0 : index
    %c0_57 = arith.constant 0 : index
    %268 = vector.load %arg7[%267, %c0_56, %c0_57] : memref<8x16x20xf32, #tpu.memory_space<vmem>>, vector<1x16x20xf32>
    %269 = vector.shape_cast %268 : vector<1x16x20xf32> to vector<16x20xf32>
    %270 = vector.shape_cast %266 : vector<16x20xf32> to vector<1x16x20xf32>
    tpu.vector_store %arg7[%267, %c0_56, %c0_57], %270 {strides = array<i32>} : memref<8x16x20xf32, #tpu.memory_space<vmem>>, vector<1x16x20xf32>,
    %c6_i32 = arith.constant 6 : i32
    %271 = arith.addi %11, %c6_i32 : i32
    %272 = arith.index_cast %c6_i32 : i32 to index
    %c0_58 = arith.constant 0 : index
    %c0_59 = arith.constant 0 : index
    %273 = vector.load %arg3[%272, %c0_58, %c0_59] : memref<8x16x60xbf16, #tpu.memory_space<vmem>>, vector<1x16x60xbf16>
    %274 = vector.shape_cast %273 : vector<1x16x60xbf16> to vector<16x60xbf16>
    %275 = arith.extf %274 : vector<16x60xbf16> to vector<16x60xf32>
    %276 = arith.addf %275, %7 : vector<16x60xf32>
    %cst_60 = arith.constant dense<0.000000e+00> : vector<16x60xf32>
    %277 = tpu.matmul %266, %4, %cst_60 {dimension_numbers = #tpu.dot_dimension_numbers<[1], [0], [0], [1], [0, 0, 1, 1], [], []>} : vector<16x20xf32>, vector<20x60xf32>, vector<16x60xf32> -> vector<16x60xf32>
    %278 = vector.extract_strided_slice %276 {offsets = [0, 0], sizes = [16, 20], strides = [1, 1]} : vector<16x60xf32> to vector<16x20xf32>
    %279 = vector.extract_strided_slice %277 {offsets = [0, 0], sizes = [16, 20], strides = [1, 1]} : vector<16x60xf32> to vector<16x20xf32>
    %280 = arith.addf %278, %279 : vector<16x20xf32>
    %281 = arith.negf %280 : vector<16x20xf32>
    %282 = math.exp %281 : vector<16x20xf32>
    %cst_61 = arith.constant 1.000000e+00 : f32
    %283 = vector.broadcast %cst_61 : f32 to vector<16x20xf32>
    %284 = arith.addf %283, %282 : vector<16x20xf32>
    %285 = arith.divf %283, %284 : vector<16x20xf32>
    %286 = vector.extract_strided_slice %276 {offsets = [0, 20], sizes = [16, 20], strides = [1, 1]} : vector<16x60xf32> to vector<16x20xf32>
    %287 = vector.extract_strided_slice %277 {offsets = [0, 20], sizes = [16, 20], strides = [1, 1]} : vector<16x60xf32> to vector<16x20xf32>
    %288 = arith.addf %286, %287 : vector<16x20xf32>
    %289 = arith.negf %288 : vector<16x20xf32>
    %290 = math.exp %289 : vector<16x20xf32>
    %cst_62 = arith.constant 1.000000e+00 : f32
    %291 = vector.broadcast %cst_62 : f32 to vector<16x20xf32>
    %292 = arith.addf %291, %290 : vector<16x20xf32>
    %293 = arith.divf %291, %292 : vector<16x20xf32>
    %294 = vector.extract_strided_slice %276 {offsets = [0, 40], sizes = [16, 20], strides = [1, 1]} : vector<16x60xf32> to vector<16x20xf32>
    %295 = vector.extract_strided_slice %277 {offsets = [0, 40], sizes = [16, 20], strides = [1, 1]} : vector<16x60xf32> to vector<16x20xf32>
    %296 = arith.addf %295, %10 : vector<16x20xf32>
    %297 = arith.mulf %285, %296 : vector<16x20xf32>
    %298 = arith.addf %294, %297 : vector<16x20xf32>
    %299 = math.tanh %298 : vector<16x20xf32>
    %cst_63 = arith.constant 1.000000e+00 : f32
    %300 = vector.broadcast %cst_63 : f32 to vector<16x20xf32>
    %301 = arith.subf %300, %293 : vector<16x20xf32>
    %302 = arith.mulf %301, %299 : vector<16x20xf32>
    %303 = arith.mulf %293, %266 : vector<16x20xf32>
    %304 = arith.addf %302, %303 : vector<16x20xf32>
    %305 = vector.broadcast %271 : i32 to vector<16x1xi32>
    %306 = arith.cmpi sgt, %3, %305 : vector<16x1xi32>
    %307 = vector.shape_cast %306 : vector<16x1xi1> to vector<16x1xi1>
    %308 = vector.broadcast %307 : vector<16x1xi1> to vector<16x20xi1>
    %309 = arith.select %308, %304, %266 : vector<16x20xi1>, vector<16x20xf32>
    %310 = arith.index_cast %c6_i32 : i32 to index
    %c0_64 = arith.constant 0 : index
    %c0_65 = arith.constant 0 : index
    %311 = vector.load %arg7[%310, %c0_64, %c0_65] : memref<8x16x20xf32, #tpu.memory_space<vmem>>, vector<1x16x20xf32>
    %312 = vector.shape_cast %311 : vector<1x16x20xf32> to vector<16x20xf32>
    %313 = vector.shape_cast %309 : vector<16x20xf32> to vector<1x16x20xf32>
    tpu.vector_store %arg7[%310, %c0_64, %c0_65], %313 {strides = array<i32>} : memref<8x16x20xf32, #tpu.memory_space<vmem>>, vector<1x16x20xf32>,
    %c7_i32 = arith.constant 7 : i32
    %314 = arith.addi %11, %c7_i32 : i32
    %315 = arith.index_cast %c7_i32 : i32 to index
    %c0_66 = arith.constant 0 : index
    %c0_67 = arith.constant 0 : index
    %316 = vector.load %arg3[%315, %c0_66, %c0_67] : memref<8x16x60xbf16, #tpu.memory_space<vmem>>, vector<1x16x60xbf16>
    %317 = vector.shape_cast %316 : vector<1x16x60xbf16> to vector<16x60xbf16>
    %318 = arith.extf %317 : vector<16x60xbf16> to vector<16x60xf32>
    %319 = arith.addf %318, %7 : vector<16x60xf32>
    %cst_68 = arith.constant dense<0.000000e+00> : vector<16x60xf32>
    %320 = tpu.matmul %309, %4, %cst_68 {dimension_numbers = #tpu.dot_dimension_numbers<[1], [0], [0], [1], [0, 0, 1, 1], [], []>} : vector<16x20xf32>, vector<20x60xf32>, vector<16x60xf32> -> vector<16x60xf32>
    %321 = vector.extract_strided_slice %319 {offsets = [0, 0], sizes = [16, 20], strides = [1, 1]} : vector<16x60xf32> to vector<16x20xf32>
    %322 = vector.extract_strided_slice %320 {offsets = [0, 0], sizes = [16, 20], strides = [1, 1]} : vector<16x60xf32> to vector<16x20xf32>
    %323 = arith.addf %321, %322 : vector<16x20xf32>
    %324 = arith.negf %323 : vector<16x20xf32>
    %325 = math.exp %324 : vector<16x20xf32>
    %cst_69 = arith.constant 1.000000e+00 : f32
    %326 = vector.broadcast %cst_69 : f32 to vector<16x20xf32>
    %327 = arith.addf %326, %325 : vector<16x20xf32>
    %328 = arith.divf %326, %327 : vector<16x20xf32>
    %329 = vector.extract_strided_slice %319 {offsets = [0, 20], sizes = [16, 20], strides = [1, 1]} : vector<16x60xf32> to vector<16x20xf32>
    %330 = vector.extract_strided_slice %320 {offsets = [0, 20], sizes = [16, 20], strides = [1, 1]} : vector<16x60xf32> to vector<16x20xf32>
    %331 = arith.addf %329, %330 : vector<16x20xf32>
    %332 = arith.negf %331 : vector<16x20xf32>
    %333 = math.exp %332 : vector<16x20xf32>
    %cst_70 = arith.constant 1.000000e+00 : f32
    %334 = vector.broadcast %cst_70 : f32 to vector<16x20xf32>
    %335 = arith.addf %334, %333 : vector<16x20xf32>
    %336 = arith.divf %334, %335 : vector<16x20xf32>
    %337 = vector.extract_strided_slice %319 {offsets = [0, 40], sizes = [16, 20], strides = [1, 1]} : vector<16x60xf32> to vector<16x20xf32>
    %338 = vector.extract_strided_slice %320 {offsets = [0, 40], sizes = [16, 20], strides = [1, 1]} : vector<16x60xf32> to vector<16x20xf32>
    %339 = arith.addf %338, %10 : vector<16x20xf32>
    %340 = arith.mulf %328, %339 : vector<16x20xf32>
    %341 = arith.addf %337, %340 : vector<16x20xf32>
    %342 = math.tanh %341 : vector<16x20xf32>
    %cst_71 = arith.constant 1.000000e+00 : f32
    %343 = vector.broadcast %cst_71 : f32 to vector<16x20xf32>
    %344 = arith.subf %343, %336 : vector<16x20xf32>
    %345 = arith.mulf %344, %342 : vector<16x20xf32>
    %346 = arith.mulf %336, %309 : vector<16x20xf32>
    %347 = arith.addf %345, %346 : vector<16x20xf32>
    %348 = vector.broadcast %314 : i32 to vector<16x1xi32>
    %349 = arith.cmpi sgt, %3, %348 : vector<16x1xi32>
    %350 = vector.shape_cast %349 : vector<16x1xi1> to vector<16x1xi1>
    %351 = vector.broadcast %350 : vector<16x1xi1> to vector<16x20xi1>
    %352 = arith.select %351, %347, %309 : vector<16x20xi1>, vector<16x20xf32>
    %353 = arith.index_cast %c7_i32 : i32 to index
    %c0_72 = arith.constant 0 : index
    %c0_73 = arith.constant 0 : index
    %354 = vector.load %arg7[%353, %c0_72, %c0_73] : memref<8x16x20xf32, #tpu.memory_space<vmem>>, vector<1x16x20xf32>
    %355 = vector.shape_cast %354 : vector<1x16x20xf32> to vector<16x20xf32>
    %356 = vector.shape_cast %352 : vector<16x20xf32> to vector<1x16x20xf32>
    tpu.vector_store %arg7[%353, %c0_72, %c0_73], %356 {strides = array<i32>} : memref<8x16x20xf32, #tpu.memory_space<vmem>>, vector<1x16x20xf32>,
    %c8_i32_74 = arith.constant 8 : i32
    %c0_75 = arith.constant 0 : index
    %c0_76 = arith.constant 0 : index
    %357 = vector.load %arg8[%c0_75, %c0_76] : memref<16x20xf32, #tpu.memory_space<vmem>>, vector<16x20xf32>
    tpu.vector_store %arg8[%c0_75, %c0_76], %352 {strides = array<i32>} : memref<16x20xf32, #tpu.memory_space<vmem>>, vector<16x20xf32>,
    return
  }
  func.func @transform_0(%arg0: i32, %arg1: i32) -> (i32, i32) {
    %c0_i32 = arith.constant 0 : i32
    %c0_i32_0 = arith.constant 0 : i32
    return %arg0, %c0_i32 : i32, i32
  }
  func.func @transform_1(%arg0: i32, %arg1: i32) -> (i32, i32, i32) {
    %c0_i32 = arith.constant 0 : i32
    %0 = arith.minsi %arg1, %c0_i32 : i32
    %c0_i32_0 = arith.constant 0 : i32
    %c0_i32_1 = arith.constant 0 : i32
    return %0, %arg0, %c0_i32_0 : i32, i32, i32
  }
  func.func @transform_2(%arg0: i32, %arg1: i32) -> (i32, i32) {
    %c0_i32 = arith.constant 0 : i32
    %c0_i32_0 = arith.constant 0 : i32
    %c0_i32_1 = arith.constant 0 : i32
    return %c0_i32, %c0_i32_0 : i32, i32
  }
  func.func @transform_3(%arg0: i32, %arg1: i32) -> (i32, i32) {
    %c0_i32 = arith.constant 0 : i32
    %c0_i32_0 = arith.constant 0 : i32
    %c0_i32_1 = arith.constant 0 : i32
    return %c0_i32, %c0_i32_0 : i32, i32
  }
  func.func @transform_4(%arg0: i32, %arg1: i32) -> (i32, i32) {
    %c0_i32 = arith.constant 0 : i32
    %c0_i32_0 = arith.constant 0 : i32
    %c0_i32_1 = arith.constant 0 : i32
    return %c0_i32, %c0_i32_0 : i32, i32
  }
  func.func @transform_5(%arg0: i32, %arg1: i32) -> (i32, i32, i32) {
    %c0_i32 = arith.constant 0 : i32
    %c0_i32_0 = arith.constant 0 : i32
    return %arg1, %arg0, %c0_i32 : i32, i32, i32
  }
}

</mosaic_0001>

<bundles_post_ra>
// kernel: tpu_custom_call.1
= control target key start
LH: loop header
LB: loop body
LE: loop exit
PB: predicated region body
PF: predicated region fallthrough
CT: control target
= control target key end

     0   :  { %10 = vsyncpa [#allocation4], 0  ;;  %s2899_s0 = inlined_call_operand.vmem [shape: s32[32,1], index: 0, kind: input, shape index: {}]   ;;  %s2900_s1 = inlined_call_operand.hbm [shape: bf16[8,32,60], index: 1, kind: input, shape index: {}]   ;;  %s2901_s2 = inlined_call_operand.vmem [shape: f32[20,60], index: 2, kind: input, shape index: {}]   ;;  %s2902_s3 = inlined_call_operand.vmem [shape: f32[1,60], index: 3, kind: input, shape index: {}]   ;;  %s2903_s4 = inlined_call_operand.vmem [shape: f32[1,20], index: 4, kind: input, shape index: {}]   ;;  %s2904_s5 = inlined_call_operand.vmem [shape: f32[8,32,20], index: 5, kind: output, shape index: {}]  }
   0x1   :  { %12 = vsyncpa [#allocation4 + $0x1], 0  ;;  %s2396_s18 = smov 0   ;;  %s2398_s19 = smov 0  }
   0x2   :  { %s2400_s20 = smov 0   ;;  %s2402_s21 = smov 0  }
   0x3   :  { %s2404_s22 = smov 0   ;;  %s2406_s23 = smov 0  }
   0x4 LB: > { %s1890_s24 = sadd.s32 4294967295, %s2352_s23   ;;  %s30_s25 = sadd.s32 1, %s2348_s22  ;;  %s2352_s23 = sphi %s2406_s23, %s18_s23   ;;  %s2348_s22 = sphi %s2404_s22, %s2912_s22   ;;  %s2344_s21 = sphi %s2402_s21, %s2911_s21   ;;  %s2340_s20 = sphi %s2400_s20, %s2910_s20   ;;  %s2336_s19 = sphi %s2398_s19, %s2909_s19   ;;  %s2332_s18 = sphi %s2396_s18, %s2908_s18  }
   0x5   : > { %p32_p0 = scmp.ge.s32.totalorder %s30_s25, 2  ;;  %s69_s26 = sadd.s32 1, %s2340_s20 }
   0x6   : > { %p76_p1 = scmp.ne.s32.totalorder %s2340_s20, %s2336_s19  ;;  %p77_p2 = scmp.eq.s32.totalorder %s2352_s23, 0 }
   0x7   : > { %s2914_s25 = smov (%p32_p0, %s30_s25), 0  ;;  %p82_p4 = scmp.ne.s32.totalorder %s2336_s19, %s2332_s18 }
   0x8   : > { %p2432_p3 = por %p77_p2, %p76_p1  ;;  %s65_s28 = ssub.s32 %s2348_s22, %s2914_s25 }
   0x9   : > { %p83_p5 = scmp.eq.s32.totalorder %s1890_s24, 0  ;;  %p67_p6 = scmp.eq.s32.totalorder %s65_s28, 0 }
   0xa   : > { %p171_p7 = scmp.eq.s32.totalorder %s1890_s24, 1  ;;  %p1893_p10 = scmp.ge.s32.totalorder %s2352_s23, 2 }
   0xb   : > { %p2439_p8 = por %p83_p5, %p82_p4 }
   0xc   : > { %s2444_s30 = scalar_select %p67_p6, %s2340_s20, %s69_s26  }
   0xd   : > { %p2446_p9 = por %p171_p7, %p76_p1  ;;  %202 = sbr.rel (%p1893_p10) target bundleno = 31 (0x1f), region = 28 }
  0x12   : > { %s215_s7 = sand.u32 1, %s2340_s20   ;;  %s1979_s8 = sshll.u32 %s2348_s22, 7 }
  0x13   : > { %s1894_s9 = sshll.u32 %s215_s7, 6  ;;  %s230_s12 = scalar_lea.hbm %s2900_s1, %s1979_s8 }
  0x14   : > { %s2132_s13 = scalar_select %p2432_p3, [#allocation0], [#allocation8] }
  0x15   : > { %s219_s14 = scalar_lea.vmem [#allocation3], %s1894_s9  ;;  %s2354_s17 = smov 256  }
  0x16   : > { %s243_s15 = sshll.u32 %s219_s14, 4  ;;  %s235_s16 = sld [smem:[%s2132_s13]]   ;;  %s244_s15 = int_to_ptr.vmem [resolvable:$true] %s243_s15 }
  0x17   : > { %2133 = sst [smem:[#allocation7]] (%p2432_p3), %s2354_s17  ;;  %s2355_s18 = smov 128  }
  0x18   : > { %2134 = sst [smem:[#allocation7 + $0x1]] (%p2432_p3), %s2355_s18  ;;  %s2356_s24 = smov 2  }
  0x19   : > { %2135 = sst [smem:[#allocation7 + $0x2]] (%p2432_p3), %s2356_s24  ;;  %s2357_s26 = smov 64  }
  0x1a   : > { %2136 = sst [smem:[#allocation7 + $0x3]] (%p2432_p3), %s2357_s26  ;;  %s2358_s8 = smov 4  }
  0x1b   : > { %2137 = sst [smem:[#allocation7 + $0x4]] (%p2432_p3), %s2357_s26  ;;  %s216_s10 = scalar_lea.sflag [#allocation4], %s215_s7 }
  0x1c   : > { %s1897_s28 = sshll.u32 %s235_s16, 26  ;;  %2138 = sst [smem:[#allocation7 + $0x5]] (%p2432_p3), %s2358_s8 }
  0x1d   : > { %s1898_s9 = sadd.s32 134217728, %s1897_s28  ;;  %s2359_s11 = smov 131072  }
  0x1e   : > { %2139 = dma.general (%p2432_p3), %s230_s12, 1024, %s244_s15, %s216_s10, %s2359_s11, [#allocation7], %s1898_s9, 0  }
  0x1f PF: > { %p1899_p11 = scmp.ge.s32.totalorder %s2352_s23, 1  ;;  %p264_p12 = scmp.lt.s32.totalorder %s2352_s23, 3 }
  0x21   : > { %p265_p13 = pnand %p1899_p11, %p264_p12 }
  0x22   : > { %s2475_s13 = sand.u32 (!%p265_p13), 1, %s2336_s19  }
  0x23   : > { %268 = sbr.rel (%p265_p13) target bundleno = 5510 (0x1586), region = 40  ;;  %s1900_s14 = sshll.u32 (!%p265_p13), %s2475_s13, 6 }
  0x24   : > { %s271_s16 = scalar_lea.sflag (!%p265_p13), [#allocation4], %s2475_s13  ;;  %s2479_s17 = scalar_lea.vmem (!%p265_p13), [#allocation3], %s1900_s14 }
  0x28   : > { %2327 = dma.done.wait (%p2439_p8), %s271_s16, 1024  }
  0x29   : > { %2329 = vsyncadd (%p2439_p8), %s271_s16, 4294966272  ;;  %vm321_vm0 = vcmask 162816   ;;  %v2360_v0 = vmov 0.0   ;;  %vm358_vm1 = vcmask 1043456   ;;  %v2490_v1 = vld [vmem:[%s2901_s2 + $0x10] sm:$0xf] }
  0x2a   : > { %322 = vst.msk [vmem:[#allocation2] sm:$0xff] %vm321_vm0, %v2360_v0  ;;  %323 = vst.msk [vmem:[#allocation2 + $0x8] sm:$0xff] %vm321_vm0, %v2360_v0  ;;  %v2495_v2 = vld [vmem:[%s2901_s2 + $0x8] sm:$0xff]  ;;  %2060 = vmatprep.subr.msk.mxu0 %vm358_vm1, %v2490_v1  ;;  %v1905_v4 = vld [vmem:[%s2903_s4] ss:$0 sm:$0xff]  ;;  %2069 = vmatprep.subr.msk.mxu1 %vm358_vm1, %v2490_v1  ;;  %s2361_s28 = smov 40  }
  0x2b   : > { %2061 = vmatpush3.msk.msra.mxu0 %vm358_vm1, %v2490_v1  ;;  %v2511_v5 = vld [vmem:[%s2901_s2] sm:$0xff]  ;;  %451 = vrot.lane.b32.xlu0 %v1905_v4, %s2361_s28  ;;  %v2362_v7 = vmov 0   ;;  %s2363_s8 = smov 88   ;;  %v1982_v13 = vld [vmem:[%s2479_s17] sm:$0xff]   ;;  %s1902_s11 = sshll.u32 %s2344_s21, 1 }
  0x2c   : > { %2062 = vmatprep.subr.mxu0 %v2495_v2  ;;  %2070 = vmatpush3.msk.msra.mxu1 %vm358_vm1, %v2490_v1  ;;  %v1984_v14 = vunpack.c.h.bf16 %v1982_v13  ;;  %v2554_v15 = vld [vmem:[%s2902_s3] ss:$0 sm:$0xff]  ;;  %v1983_v16 = vunpack.c.l.bf16 %v1982_v13  ;;  %p306_p0 = scmp.lt.s32.totalorder %s1902_s11, 3  ;;  %s2364_s12 = smov 20  }
  0x2d   : > { %2063 = vmatpush3.msra.mxu0 %v2495_v2  ;;  %2071 = vmatprep.subr.mxu1 %v2495_v2  ;;  %s2365_s15 = smov 108   ;;  %s1901_s29 = sshll.u32 %s2475_s13, 7 }
  0x2e   : > { %2064 = vmatprep.subr.mxu0 %v2511_v5  ;;  %2072 = vmatpush3.msra.mxu1 %v2495_v2  ;;  %v350_v17 = vadd.f32 %v1984_v14, %v2554_v15  ;;  %v349_v18 = vadd.f32 %v1983_v16, %v2554_v15  ;;  %s2916_s11 = smov (!%p306_p0, %s1902_s11), 3  ;;  %s2589_s18 = scalar_lea.vmem [#allocation5], %s1901_s29 }
  0x2f   : > { %2065 = vmatpush3.msra.mxu0 %v2511_v5  ;;  %2073 = vmatprep.subr.mxu1 %v2511_v5  ;;  %s1903_s14 = sshll.u32 %s2916_s11, 3 }
  0x30   : > { %2074 = vmatpush3.msra.mxu1 %v2511_v5  ;;  %2078 = vmatprep.subr.msk.mxu0 %vm358_vm1, %v2490_v1  ;;  %s2562_s7 = scalar_lea.vmem %s2899_s0, %s1903_s14 }
  0x31   : > { %v2499_v3 = vld [vmem:[#allocation2] sm:$0xff]  ;;  %v2518_v6 = vld [vmem:[#allocation2 + $0x8] sm:$0xff]  ;;  %2087 = vmatprep.subr.msk.mxu1 %vm358_vm1, %v2490_v1  ;;  %2201 = vset.pattern.permute.xlu1 %v2362_v7 }
  0x32   : > { %2066 = vmatprep.mubr.msk.f32.mxu0 %vm321_vm0, %v2499_v3  ;;  %2202 = vset.pattern.permute.xlu0 %v2362_v7  ;;  %v2565_v27 = vld [vmem:[%s2562_s7 + $0x8] sm:$0xff]  ;;  %v2568_v30 = vld [vmem:[%s2562_s7] sm:$0xff] }
  0x33   : > { %2067 = vmatmul.mubr.msk.f32.vlgmr.msra.gmra.mxu0 %vm321_vm0, %v2518_v6  ;;  %vm502_vm2 = vcmp.gt.s32.totalorder %v2565_v27, 0  ;;  %vm501_vm3 = vcmp.gt.s32.totalorder %v2568_v30, 0  ;;  %vm668_vm6 = vcmp.gt.s32.totalorder %v2565_v27, 1  ;;  %vm667_vm7 = vcmp.gt.s32.totalorder %v2568_v30, 1 }
  0x34   : > { %2079 = vmatpush3.msk.msra.mxu0 %vm358_vm1, %v2490_v1  ;;  %v504_v35 = vsel %vm502_vm2, 1, %v2362_v7  ;;  %v503_v36 = vsel %vm501_vm3, 1, %v2362_v7  ;;  %vm835_vm10 = vcmp.gt.s32.totalorder %v2565_v27, 2  ;;  %vm834_vm11 = vcmp.gt.s32.totalorder %v2568_v30, 2 }
  0x35   : > { %2080 = vmatprep.subr.mxu0 %v2495_v2  ;;  %vm1002_vm14 = vcmp.gt.s32.totalorder %v2565_v27, 3  ;;  %vm1001_vm15 = vcmp.gt.s32.totalorder %v2568_v30, 3 }
  0x36   : > { %2081 = vmatpush3.msra.mxu0 %v2495_v2 }
  0x37   : > { %2082 = vmatprep.subr.mxu0 %v2511_v5 }
  0x38   : > { %2083 = vmatpush3.msra.mxu0 %v2511_v5 }
  0x39   : > { %2096 = vmatprep.subr.msk.mxu0 %vm358_vm1, %v2490_v1 }
  0x9d   : > { %v2544_v8 = vpop.permute.xlu0 %451 }
  0xf3   : > { %v2068_v9 = vpop.f32.mrf.mxu0 }
  0xf4   : > { %v455_v10 = vadd.f32 %v2068_v9, %v2544_v8  ;;  %v438_v19 = vadd.f32 %v2068_v9, %v350_v17 }
  0xf5   : > { %v428_v11 = vpop.f32.mrf.mxu0 }
  0xf6   : > { %v454_v12 = vadd.f32 %v2544_v8, %v428_v11  ;;  %460 = vrot.lane.b32.xlu1 %v455_v10, %s2363_s8  ;;  %v437_v20 = vadd.f32 %v428_v11, %v349_v18  ;;  %v1910_v21 = vmul.f32 -1.442695, %v438_v19 }
  0xf8   : > { %458 = vrot.lane.b32.xlu0 %v454_v12, %s2363_s8  ;;  %v1909_v22 = vmul.f32 -1.442695, %v437_v20  ;;  %2203 = vpow2.f32 %v1910_v21 }
  0xfa   : > { %2205 = vpow2.f32 %v1909_v22 }
 0x105   : > { %v2204_v23 = vpop.eup %2203 }
 0x106   : > { %v446_v25 = vadd.f32 1.0, %v2204_v23 }
 0x107   : > { %v2206_v24 = vpop.eup %2205 }
 0x108   : > { %v445_v26 = vadd.f32 1.0, %v2206_v24  ;;  %2207 = vrcp.f32 %v446_v25 }
 0x10a   : > { %2209 = vrcp.f32 %v445_v26  ;;  %v670_v26 = vsel %vm668_vm6, 1, %v2362_v7 }
 0x115   : > { %v2208_v28 = vpop.eup %2207 }
 0x116   : > { %v479_v51 = vsub.f32 1.0, %v2208_v28 }
 0x117   : > { %v2210_v32 = vpop.eup %2209 }
 0x118   : > { %v478_v46 = vsub.f32 1.0, %v2210_v32 }
 0x168   : > { %v461_v29 = vpop.permute.xlu1 %460 }
 0x169   : > { %v465_v31 = vmul.f32 %v2208_v28, %v461_v29 }
 0x16a   : > { %v459_v33 = vpop.permute.xlu0 %458 }
 0x16b   : > { %v464_v34 = vmul.f32 %v2210_v32, %v459_v33  ;;  %470 = vrot.lane.b32.xlu0 %v465_v31, %s2361_s28 }
 0x16d   : > { %468 = vrot.lane.b32.xlu1 %v464_v34, %s2361_s28 }
 0x16f   : > { %509 = vperm.xlu0 %2202, %v504_v35  }
 0x171   : > { %506 = vperm.xlu1 %2201, %v503_v36  }
 0x175   : > { %490 = vrot.lane.b32.xlu1 %v2499_v3, %s2364_s12  ;;  %v2013_v3 = vld [vmem:[%s2479_s17 + $0x8] sm:$0xff]  }
 0x176   : > { %v1988_v4 = vunpack.c.h.bf16 %v2013_v3 }
 0x178   : > { %v532_v9 = vadd.f32 %v1988_v4, %v2554_v15 }
 0x1dd   : > { %v471_v37 = vpop.permute.xlu0 %470 }
 0x1de   : > { %v475_v38 = vadd.f32 %v471_v37, %v350_v17 }
 0x1df   : > { %v469_v39 = vpop.permute.xlu1 %468 }
 0x1e0   : > { %2211 = vtanh.f32 %v475_v38  ;;  %v474_v40 = vadd.f32 %v469_v39, %v349_v18 }
 0x1e2   : > { %2213 = vtanh.f32 %v474_v40 }
 0x1ea   : > { %v510_v45 = vpop.permute.xlu0 %509 }
 0x1eb   : > { %vm512_vm5 = vcmp.eq.s32.totalorder %v510_v45, 1 }
 0x1ec   : > { %v507_v43 = vpop.permute.xlu1 %506 }
 0x1ed   : > { %v2212_v41 = vpop.eup %2211  ;;  %vm511_vm4 = vcmp.eq.s32.totalorder %v507_v43, 1 }
 0x1ee   : > { %484 = vrot.lane.b32.xlu0 %v2212_v41, %s2365_s15 }
 0x1ef   : > { %v2214_v42 = vpop.eup %2213 }
 0x1f0   : > { %482 = vrot.lane.b32.xlu1 %v2214_v42, %s2365_s15  ;;  %v491_v44 = vpop.permute.xlu1 %490 }
 0x1f1   : > { %v496_v48 = vmul.f32 %v2210_v32, %v491_v44 }
 0x1f4   : > { %492 = vrot.lane.b32.xlu1 %v2518_v6, %s2364_s12  ;;  %v1987_v6 = vunpack.c.l.bf16 %v2013_v3 }
 0x1f6   : > { %v531_v10 = vadd.f32 %v1987_v6, %v2554_v15 }
 0x260   : > { %v485_v50 = vpop.permute.xlu0 %484 }
 0x261   : > { %v489_v54 = vmul.f32 %v485_v50, %v479_v51 }
 0x262   : > { %v483_v47 = vpop.permute.xlu1 %482 }
 0x263   : > { %v488_v49 = vmul.f32 %v483_v47, %v478_v46 }
 0x265   : > { %v498_v52 = vadd.f32 %v496_v48, %v488_v49 }
 0x266   : > { %v493_v53 = vpop.permute.xlu1 %492 }
 0x267   : > { %v497_v55 = vmul.f32 %v2208_v28, %v493_v53  ;;  %v2580_v56 = vsel %vm511_vm4, %v498_v52, %v491_v44  ;;  %v669_v28 = vsel %vm667_vm7, 1, %v2362_v7  ;;  %vm1169_vm4 = vcmp.gt.s32.totalorder %v2565_v27, 4 }
 0x268   : > { %517 = vrot.lane.b32.xlu0 %v2580_v56, %s2365_s15 }
 0x269   : > { %v499_v57 = vadd.f32 %v497_v55, %v489_v54 }
 0x26b   : > { %v2584_v58 = vsel %vm512_vm5, %v499_v57, %v493_v53  ;;  %vm1168_vm5 = vcmp.gt.s32.totalorder %v2568_v30, 4 }
 0x26c   : > { %519 = vrot.lane.b32.xlu1 %v2584_v58, %s2365_s15 }
 0x2da   : > { %v518_v59 = vpop.permute.xlu0 %517 }
 0x2db   : > { %523 = vst.msk [vmem:[%s2589_s18] sm:$0xff] %vm321_vm0, %v518_v59  ;;  %2075 = vmatprep.mubr.msk.f32.mxu1 %vm321_vm0, %v518_v59 }
 0x2de   : > { %v520_v60 = vpop.permute.xlu1 %519 }
 0x2df   : > { %524 = vst.msk [vmem:[%s2589_s18 + $0x8] sm:$0xff] %vm321_vm0, %v520_v60  ;;  %2076 = vmatmul.mubr.msk.f32.vlgmr.msra.gmra.mxu1 %vm321_vm0, %v520_v60 }
 0x2e0   : > { %2088 = vmatpush3.msk.msra.mxu1 %vm358_vm1, %v2490_v1 }
 0x2e1   : > { %2089 = vmatprep.subr.mxu1 %v2495_v2 }
 0x2e2   : > { %2090 = vmatpush3.msra.mxu1 %v2495_v2 }
 0x2e3   : > { %2091 = vmatprep.subr.mxu1 %v2511_v5 }
 0x2e4   : > { %2092 = vmatpush3.msra.mxu1 %v2511_v5 }
 0x2e5   : > { %2105 = vmatprep.subr.msk.mxu1 %vm358_vm1, %v2490_v1 }
 0x39f   : > { %v2077_v61 = vpop.f32.mrf.mxu1 }
 0x3a0   : > { %v627_v62 = vadd.f32 %v2077_v61, %v2544_v8  ;;  %v613_v11 = vadd.f32 %v2077_v61, %v532_v9 }
 0x3a1   : > { %v603_v63 = vpop.f32.mrf.mxu1 }
 0x3a2   : > { %v626_v0 = vadd.f32 %v603_v63, %v2544_v8  ;;  %632 = vrot.lane.b32.xlu1 %v627_v62, %s2363_s8  ;;  %v612_v12 = vadd.f32 %v603_v63, %v531_v10  ;;  %v1917_v13 = vmul.f32 -1.442695, %v613_v11 }
 0x3a4   : > { %630 = vrot.lane.b32.xlu0 %v626_v0, %s2363_s8  ;;  %v1916_v14 = vmul.f32 -1.442695, %v612_v12  ;;  %2215 = vpow2.f32 %v1917_v13 }
 0x3a6   : > { %2217 = vpow2.f32 %v1916_v14 }
 0x3b1   : > { %v2216_v16 = vpop.eup %2215 }
 0x3b2   : > { %v621_v18 = vadd.f32 1.0, %v2216_v16 }
 0x3b3   : > { %v2218_v17 = vpop.eup %2217 }
 0x3b4   : > { %v620_v19 = vadd.f32 1.0, %v2218_v17  ;;  %2219 = vrcp.f32 %v621_v18  ;;  %v837_v17 = vsel %vm835_vm10, 1, %v2362_v7  ;;  %v836_v18 = vsel %vm834_vm11, 1, %v2362_v7 }
 0x3b5   : > { %vm1503_vm11 = vcmp.gt.s32.totalorder %v2565_v27, 6 }
 0x3b6   : > { %2221 = vrcp.f32 %v620_v19 }
 0x3c1   : > { %v2220_v20 = vpop.eup %2219 }
 0x3c2   : > { %v651_v38 = vsub.f32 1.0, %v2220_v20  ;;  %v663_v40 = vmul.f32 %v2220_v20, %v2584_v58 }
 0x3c3   : > { %v2222_v23 = vpop.eup %2221 }
 0x3c4   : > { %v650_v42 = vsub.f32 1.0, %v2222_v23  ;;  %v662_v45 = vmul.f32 %v2222_v23, %v2580_v56 }
 0x414   : > { %v633_v21 = vpop.permute.xlu1 %632 }
 0x415   : > { %v637_v22 = vmul.f32 %v2220_v20, %v633_v21 }
 0x416   : > { %v631_v24 = vpop.permute.xlu0 %630 }
 0x417   : > { %v636_v25 = vmul.f32 %v2222_v23, %v631_v24  ;;  %642 = vrot.lane.b32.xlu1 %v637_v22, %s2361_s28 }
 0x419   : > { %640 = vrot.lane.b32.xlu0 %v636_v25, %s2361_s28 }
 0x41b   : > { %675 = vperm.xlu1 %2201, %v670_v26  }
 0x41d   : > { %672 = vperm.xlu0 %2202, %v669_v28  }
 0x489   : > { %v643_v29 = vpop.permute.xlu1 %642 }
 0x48a   : > { %v647_v31 = vadd.f32 %v643_v29, %v532_v9 }
 0x48b   : > { %v641_v32 = vpop.permute.xlu0 %640 }
 0x48c   : > { %2223 = vtanh.f32 %v647_v31  ;;  %v646_v33 = vadd.f32 %v641_v32, %v531_v10 }
 0x48e   : > { %2225 = vtanh.f32 %v646_v33 }
 0x496   : > { %v676_v36 = vpop.permute.xlu1 %675 }
 0x497   : > { %vm678_vm8 = vcmp.eq.s32.totalorder %v676_v36, 1 }
 0x498   : > { %v673_v37 = vpop.permute.xlu0 %672 }
 0x499   : > { %v2224_v34 = vpop.eup %2223  ;;  %vm677_vm9 = vcmp.eq.s32.totalorder %v673_v37, 1 }
 0x49a   : > { %656 = vrot.lane.b32.xlu1 %v2224_v34, %s2365_s15 }
 0x49b   : > { %v2226_v35 = vpop.eup %2225 }
 0x49c   : > { %654 = vrot.lane.b32.xlu0 %v2226_v35, %s2365_s15 }
 0x50c   : > { %v657_v39 = vpop.permute.xlu1 %656 }
 0x50d   : > { %v661_v41 = vmul.f32 %v657_v39, %v651_v38 }
 0x50e   : > { %v655_v43 = vpop.permute.xlu0 %654 }
 0x50f   : > { %v665_v44 = vadd.f32 %v663_v40, %v661_v41  ;;  %v660_v46 = vmul.f32 %v655_v43, %v650_v42 }
 0x511   : > { %v664_v47 = vadd.f32 %v662_v45, %v660_v46  ;;  %v2623_v48 = vsel %vm678_vm8, %v665_v44, %v2584_v58  ;;  %vm1335_vm8 = vcmp.gt.s32.totalorder %v2568_v30, 5 }
 0x512   : > { %685 = vrot.lane.b32.xlu1 %v2623_v48, %s2365_s15 }
 0x513   : > { %v2628_v49 = vsel %vm677_vm9, %v664_v47, %v2580_v56  ;;  %v2014_v56 = vld [vmem:[%s2479_s17 + $0x10] sm:$0xff]   ;;  %v2015_v47 = vld [vmem:[%s2479_s17 + $0x18] sm:$0xff]  }
 0x514   : > { %683 = vrot.lane.b32.xlu0 %v2628_v49, %s2365_s15  ;;  %v1992_v57 = vunpack.c.h.bf16 %v2014_v56  ;;  %v1991_v58 = vunpack.c.l.bf16 %v2014_v56 }
 0x516   : > { %v699_v59 = vadd.f32 %v1992_v57, %v2554_v15  ;;  %v698_v60 = vadd.f32 %v1991_v58, %v2554_v15 }
 0x584   : > { %v686_v50 = vpop.permute.xlu1 %685 }
 0x585   : > { %1919 = vst.msk [vmem:[%s2589_s18 + $0x18] sm:$0xff] %vm321_vm0, %v686_v50 }
 0x586   : > { %v684_v51 = vpop.permute.xlu0 %683 }
 0x587   : > { %1918 = vst.msk [vmem:[%s2589_s18 + $0x10] sm:$0xff] %vm321_vm0, %v684_v51  ;;  %2084 = vmatprep.mubr.msk.f32.mxu0 %vm321_vm0, %v684_v51 }
 0x588   : > { %2085 = vmatmul.mubr.msk.f32.vlgmr.msra.gmra.mxu0 %vm321_vm0, %v686_v50 }
 0x589   : > { %2097 = vmatpush3.msk.msra.mxu0 %vm358_vm1, %v2490_v1 }
 0x58a   : > { %2098 = vmatprep.subr.mxu0 %v2495_v2 }
 0x58b   : > { %2099 = vmatpush3.msra.mxu0 %v2495_v2 }
 0x58c   : > { %2100 = vmatprep.subr.mxu0 %v2511_v5 }
 0x58d   : > { %2101 = vmatpush3.msra.mxu0 %v2511_v5 }
 0x58e   : > { %2114 = vmatprep.subr.msk.mxu0 %vm358_vm1, %v2490_v1 }
 0x648   : > { %v2086_v52 = vpop.f32.mrf.mxu0 }
 0x649   : > { %v794_v53 = vadd.f32 %v2086_v52, %v2544_v8  ;;  %v780_v61 = vadd.f32 %v2086_v52, %v699_v59 }
 0x64a   : > { %v770_v54 = vpop.f32.mrf.mxu0 }
 0x64b   : > { %v793_v55 = vadd.f32 %v770_v54, %v2544_v8  ;;  %799 = vrot.lane.b32.xlu1 %v794_v53, %s2363_s8  ;;  %v779_v62 = vadd.f32 %v770_v54, %v698_v60  ;;  %v1926_v63 = vmul.f32 -1.442695, %v780_v61 }
 0x64d   : > { %797 = vrot.lane.b32.xlu0 %v793_v55, %s2363_s8  ;;  %v1925_v0 = vmul.f32 -1.442695, %v779_v62  ;;  %2227 = vpow2.f32 %v1926_v63 }
 0x64f   : > { %2229 = vpow2.f32 %v1925_v0 }
 0x65a   : > { %v2228_v3 = vpop.eup %2227 }
 0x65b   : > { %v788_v6 = vadd.f32 1.0, %v2228_v3 }
 0x65c   : > { %v2230_v4 = vpop.eup %2229 }
 0x65d   : > { %v787_v9 = vadd.f32 1.0, %v2230_v4  ;;  %2231 = vrcp.f32 %v788_v6  ;;  %v1004_v4 = vsel %vm1002_vm14, 1, %v2362_v7  ;;  %v1003_v6 = vsel %vm1001_vm15, 1, %v2362_v7 }
 0x65f   : > { %2233 = vrcp.f32 %v787_v9 }
 0x66a   : > { %v2232_v10 = vpop.eup %2231 }
 0x66b   : > { %v818_v28 = vsub.f32 1.0, %v2232_v10  ;;  %v830_v31 = vmul.f32 %v2232_v10, %v2623_v48 }
 0x66c   : > { %v2234_v13 = vpop.eup %2233 }
 0x66d   : > { %v817_v33 = vsub.f32 1.0, %v2234_v13  ;;  %v829_v36 = vmul.f32 %v2234_v13, %v2628_v49 }
 0x6bd   : > { %v800_v11 = vpop.permute.xlu1 %799 }
 0x6be   : > { %v804_v12 = vmul.f32 %v2232_v10, %v800_v11 }
 0x6bf   : > { %v798_v14 = vpop.permute.xlu0 %797 }
 0x6c0   : > { %v803_v16 = vmul.f32 %v2234_v13, %v798_v14  ;;  %809 = vrot.lane.b32.xlu1 %v804_v12, %s2361_s28 }
 0x6c2   : > { %807 = vrot.lane.b32.xlu0 %v803_v16, %s2361_s28 }
 0x6c4   : > { %842 = vperm.xlu1 %2201, %v837_v17  }
 0x6c6   : > { %839 = vperm.xlu0 %2202, %v836_v18  }
 0x732   : > { %v810_v19 = vpop.permute.xlu1 %809 }
 0x733   : > { %v814_v20 = vadd.f32 %v810_v19, %v699_v59 }
 0x734   : > { %v808_v21 = vpop.permute.xlu0 %807 }
 0x735   : > { %2235 = vtanh.f32 %v814_v20  ;;  %v813_v22 = vadd.f32 %v808_v21, %v698_v60 }
 0x737   : > { %2237 = vtanh.f32 %v813_v22 }
 0x73f   : > { %v843_v25 = vpop.permute.xlu1 %842 }
 0x740   : > { %vm845_vm12 = vcmp.eq.s32.totalorder %v843_v25, 1 }
 0x741   : > { %v840_v26 = vpop.permute.xlu0 %839 }
 0x742   : > { %v2236_v23 = vpop.eup %2235  ;;  %vm844_vm13 = vcmp.eq.s32.totalorder %v840_v26, 1 }
 0x743   : > { %823 = vrot.lane.b32.xlu1 %v2236_v23, %s2365_s15 }
 0x744   : > { %v2238_v24 = vpop.eup %2237 }
 0x745   : > { %821 = vrot.lane.b32.xlu0 %v2238_v24, %s2365_s15 }
 0x7b5   : > { %v824_v29 = vpop.permute.xlu1 %823 }
 0x7b6   : > { %v828_v32 = vmul.f32 %v824_v29, %v818_v28 }
 0x7b7   : > { %v822_v34 = vpop.permute.xlu0 %821 }
 0x7b8   : > { %v832_v35 = vadd.f32 %v830_v31, %v828_v32  ;;  %v827_v37 = vmul.f32 %v822_v34, %v817_v33 }
 0x7ba   : > { %v831_v38 = vadd.f32 %v829_v36, %v827_v37  ;;  %v2664_v39 = vsel %vm845_vm12, %v832_v35, %v2623_v48  ;;  %v1996_v48 = vunpack.c.h.bf16 %v2015_v47  ;;  %vm1502_vm12 = vcmp.gt.s32.totalorder %v2568_v30, 6 }
 0x7bb   : > { %852 = vrot.lane.b32.xlu1 %v2664_v39, %s2365_s15 }
 0x7bc   : > { %v2669_v40 = vsel %vm844_vm13, %v831_v38, %v2628_v49  ;;  %v1995_v49 = vunpack.c.l.bf16 %v2015_v47  ;;  %v866_v50 = vadd.f32 %v1996_v48, %v2554_v15  ;;  %v2016_v38 = vld [vmem:[%s2479_s17 + $0x20] sm:$0xff]  }
 0x7bd   : > { %850 = vrot.lane.b32.xlu0 %v2669_v40, %s2365_s15 }
 0x7be   : > { %v865_v51 = vadd.f32 %v1995_v49, %v2554_v15 }
 0x82d   : > { %v853_v41 = vpop.permute.xlu1 %852 }
 0x82e   : > { %1928 = vst.msk [vmem:[%s2589_s18 + $0x28] sm:$0xff] %vm321_vm0, %v853_v41 }
 0x82f   : > { %v851_v42 = vpop.permute.xlu0 %850 }
 0x830   : > { %1927 = vst.msk [vmem:[%s2589_s18 + $0x20] sm:$0xff] %vm321_vm0, %v851_v42  ;;  %2093 = vmatprep.mubr.msk.f32.mxu1 %vm321_vm0, %v851_v42 }
 0x831   : > { %2094 = vmatmul.mubr.msk.f32.vlgmr.msra.gmra.mxu1 %vm321_vm0, %v853_v41 }
 0x832   : > { %2106 = vmatpush3.msk.msra.mxu1 %vm358_vm1, %v2490_v1 }
 0x833   : > { %2107 = vmatprep.subr.mxu1 %v2495_v2 }
 0x834   : > { %2108 = vmatpush3.msra.mxu1 %v2495_v2 }
 0x835   : > { %2109 = vmatprep.subr.mxu1 %v2511_v5 }
 0x836   : > { %2110 = vmatpush3.msra.mxu1 %v2511_v5 }
 0x837   : > { %2123 = vmatprep.subr.msk.mxu1 %vm358_vm1, %v2490_v1 }
 0x8f1   : > { %v2095_v43 = vpop.f32.mrf.mxu1 }
 0x8f2   : > { %v961_v44 = vadd.f32 %v2095_v43, %v2544_v8  ;;  %v947_v52 = vadd.f32 %v2095_v43, %v866_v50 }
 0x8f3   : > { %v937_v45 = vpop.f32.mrf.mxu1 }
 0x8f4   : > { %v960_v46 = vadd.f32 %v937_v45, %v2544_v8  ;;  %966 = vrot.lane.b32.xlu1 %v961_v44, %s2363_s8  ;;  %v946_v53 = vadd.f32 %v937_v45, %v865_v51  ;;  %v1935_v54 = vmul.f32 -1.442695, %v947_v52 }
 0x8f6   : > { %964 = vrot.lane.b32.xlu0 %v960_v46, %s2363_s8  ;;  %v1934_v55 = vmul.f32 -1.442695, %v946_v53  ;;  %2239 = vpow2.f32 %v1935_v54 }
 0x8f8   : > { %2241 = vpow2.f32 %v1934_v55 }
 0x903   : > { %v2240_v56 = vpop.eup %2239 }
 0x904   : > { %v955_v58 = vadd.f32 1.0, %v2240_v56 }
 0x905   : > { %v2242_v57 = vpop.eup %2241 }
 0x906   : > { %v954_v59 = vadd.f32 1.0, %v2242_v57  ;;  %2243 = vrcp.f32 %v955_v58  ;;  %v1171_v57 = vsel %vm1169_vm4, 1, %v2362_v7  ;;  %v1170_v58 = vsel %vm1168_vm5, 1, %v2362_v7 }
 0x908   : > { %2245 = vrcp.f32 %v954_v59 }
 0x913   : > { %v2244_v60 = vpop.eup %2243 }
 0x914   : > { %v985_v18 = vsub.f32 1.0, %v2244_v60  ;;  %v997_v20 = vmul.f32 %v2244_v60, %v2664_v39 }
 0x915   : > { %v2246_v63 = vpop.eup %2245 }
 0x916   : > { %v984_v22 = vsub.f32 1.0, %v2246_v63  ;;  %v996_v25 = vmul.f32 %v2246_v63, %v2669_v40 }
 0x966   : > { %v967_v61 = vpop.permute.xlu1 %966 }
 0x967   : > { %v971_v62 = vmul.f32 %v2244_v60, %v967_v61 }
 0x968   : > { %v965_v0 = vpop.permute.xlu0 %964 }
 0x969   : > { %v970_v3 = vmul.f32 %v2246_v63, %v965_v0  ;;  %976 = vrot.lane.b32.xlu1 %v971_v62, %s2361_s28 }
 0x96b   : > { %974 = vrot.lane.b32.xlu0 %v970_v3, %s2361_s28 }
 0x96d   : > { %1009 = vperm.xlu1 %2201, %v1004_v4  }
 0x96f   : > { %1006 = vperm.xlu0 %2202, %v1003_v6  }
 0x9db   : > { %v977_v9 = vpop.permute.xlu1 %976 }
 0x9dc   : > { %v981_v10 = vadd.f32 %v977_v9, %v866_v50 }
 0x9dd   : > { %v975_v11 = vpop.permute.xlu0 %974 }
 0x9de   : > { %2247 = vtanh.f32 %v981_v10  ;;  %v980_v12 = vadd.f32 %v975_v11, %v865_v51 }
 0x9e0   : > { %2249 = vtanh.f32 %v980_v12 }
 0x9e8   : > { %v1010_v16 = vpop.permute.xlu1 %1009 }
 0x9e9   : > { %vm1012_vm2 = vcmp.eq.s32.totalorder %v1010_v16, 1 }
 0x9ea   : > { %v1007_v17 = vpop.permute.xlu0 %1006 }
 0x9eb   : > { %v2248_v13 = vpop.eup %2247  ;;  %vm1011_vm3 = vcmp.eq.s32.totalorder %v1007_v17, 1 }
 0x9ec   : > { %990 = vrot.lane.b32.xlu1 %v2248_v13, %s2365_s15 }
 0x9ed   : > { %v2250_v14 = vpop.eup %2249 }
 0x9ee   : > { %988 = vrot.lane.b32.xlu0 %v2250_v14, %s2365_s15 }
 0xa5e   : > { %v991_v19 = vpop.permute.xlu1 %990 }
 0xa5f   : > { %v995_v21 = vmul.f32 %v991_v19, %v985_v18 }
 0xa60   : > { %v989_v23 = vpop.permute.xlu0 %988 }
 0xa61   : > { %v999_v24 = vadd.f32 %v997_v20, %v995_v21  ;;  %v994_v26 = vmul.f32 %v989_v23, %v984_v22 }
 0xa63   : > { %v998_v28 = vadd.f32 %v996_v25, %v994_v26  ;;  %v2705_v29 = vsel %vm1012_vm2, %v999_v24, %v2664_v39  ;;  %v2000_v39 = vunpack.c.h.bf16 %v2016_v38 }
 0xa64   : > { %1019 = vrot.lane.b32.xlu1 %v2705_v29, %s2365_s15 }
 0xa65   : > { %v2710_v31 = vsel %vm1011_vm3, %v998_v28, %v2669_v40  ;;  %v1999_v40 = vunpack.c.l.bf16 %v2016_v38  ;;  %v1033_v41 = vadd.f32 %v2000_v39, %v2554_v15  ;;  %v2017_v28 = vld [vmem:[%s2479_s17 + $0x28] sm:$0xff]  }
 0xa66   : > { %1017 = vrot.lane.b32.xlu0 %v2710_v31, %s2365_s15 }
 0xa67   : > { %v1032_v42 = vadd.f32 %v1999_v40, %v2554_v15 }
 0xad6   : > { %v1020_v32 = vpop.permute.xlu1 %1019 }
 0xad7   : > { %1937 = vst.msk [vmem:[%s2589_s18 + $0x38] sm:$0xff] %vm321_vm0, %v1020_v32 }
 0xad8   : > { %v1018_v33 = vpop.permute.xlu0 %1017 }
 0xad9   : > { %1936 = vst.msk [vmem:[%s2589_s18 + $0x30] sm:$0xff] %vm321_vm0, %v1018_v33  ;;  %2102 = vmatprep.mubr.msk.f32.mxu0 %vm321_vm0, %v1018_v33 }
 0xada   : > { %2103 = vmatmul.mubr.msk.f32.vlgmr.msra.gmra.mxu0 %vm321_vm0, %v1020_v32 }
 0xadb   : > { %2115 = vmatpush3.msk.msra.mxu0 %vm358_vm1, %v2490_v1 }
 0xadc   : > { %2116 = vmatprep.subr.mxu0 %v2495_v2 }
 0xadd   : > { %2117 = vmatpush3.msra.mxu0 %v2495_v2 }
 0xade   : > { %2118 = vmatprep.subr.mxu0 %v2511_v5 }
 0xadf   : > { %2119 = vmatpush3.msra.mxu0 %v2511_v5 }
 0xb9a   : > { %v2104_v34 = vpop.f32.mrf.mxu0 }
 0xb9b   : > { %v1128_v35 = vadd.f32 %v2104_v34, %v2544_v8  ;;  %v1114_v43 = vadd.f32 %v2104_v34, %v1033_v41 }
 0xb9c   : > { %v1104_v36 = vpop.f32.mrf.mxu0 }
 0xb9d   : > { %v1127_v37 = vadd.f32 %v1104_v36, %v2544_v8  ;;  %1133 = vrot.lane.b32.xlu1 %v1128_v35, %s2363_s8  ;;  %v1113_v44 = vadd.f32 %v1104_v36, %v1032_v42  ;;  %v1944_v45 = vmul.f32 -1.442695, %v1114_v43 }
 0xb9f   : > { %1131 = vrot.lane.b32.xlu0 %v1127_v37, %s2363_s8  ;;  %v1943_v46 = vmul.f32 -1.442695, %v1113_v44  ;;  %2251 = vpow2.f32 %v1944_v45 }
 0xba1   : > { %2253 = vpow2.f32 %v1943_v46  ;;  %v1337_v46 = vsel %vm1335_vm8, 1, %v2362_v7 }
 0xbac   : > { %v2252_v47 = vpop.eup %2251 }
 0xbad   : > { %v1122_v49 = vadd.f32 1.0, %v2252_v47 }
 0xbae   : > { %v2254_v48 = vpop.eup %2253 }
 0xbaf   : > { %v1121_v50 = vadd.f32 1.0, %v2254_v48  ;;  %2255 = vrcp.f32 %v1122_v49 }
 0xbb1   : > { %2257 = vrcp.f32 %v1121_v50 }
 0xbbc   : > { %v2256_v51 = vpop.eup %2255 }
 0xbbd   : > { %v1152_v6 = vsub.f32 1.0, %v2256_v51  ;;  %v1164_v10 = vmul.f32 %v2256_v51, %v2705_v29 }
 0xbbe   : > { %v2258_v54 = vpop.eup %2257 }
 0xbbf   : > { %v1151_v12 = vsub.f32 1.0, %v2258_v54  ;;  %v1163_v16 = vmul.f32 %v2258_v54, %v2710_v31 }
 0xc0f   : > { %v1134_v52 = vpop.permute.xlu1 %1133 }
 0xc10   : > { %v1138_v53 = vmul.f32 %v2256_v51, %v1134_v52 }
 0xc11   : > { %v1132_v55 = vpop.permute.xlu0 %1131 }
 0xc12   : > { %v1137_v56 = vmul.f32 %v2258_v54, %v1132_v55  ;;  %1143 = vrot.lane.b32.xlu1 %v1138_v53, %s2361_s28 }
 0xc14   : > { %1141 = vrot.lane.b32.xlu0 %v1137_v56, %s2361_s28 }
 0xc16   : > { %1176 = vperm.xlu1 %2201, %v1171_v57  }
 0xc18   : > { %1173 = vperm.xlu0 %2202, %v1170_v58  }
 0xc84   : > { %v1144_v59 = vpop.permute.xlu1 %1143 }
 0xc85   : > { %v1148_v60 = vadd.f32 %v1144_v59, %v1033_v41 }
 0xc86   : > { %v1142_v61 = vpop.permute.xlu0 %1141 }
 0xc87   : > { %2259 = vtanh.f32 %v1148_v60  ;;  %v1147_v62 = vadd.f32 %v1142_v61, %v1032_v42 }
 0xc89   : > { %2261 = vtanh.f32 %v1147_v62 }
 0xc91   : > { %v1177_v3 = vpop.permute.xlu1 %1176 }
 0xc92   : > { %vm1179_vm6 = vcmp.eq.s32.totalorder %v1177_v3, 1 }
 0xc93   : > { %v1174_v4 = vpop.permute.xlu0 %1173 }
 0xc94   : > { %v2260_v63 = vpop.eup %2259  ;;  %vm1178_vm7 = vcmp.eq.s32.totalorder %v1174_v4, 1 }
 0xc95   : > { %1157 = vrot.lane.b32.xlu1 %v2260_v63, %s2365_s15 }
 0xc96   : > { %v2262_v0 = vpop.eup %2261 }
 0xc97   : > { %1155 = vrot.lane.b32.xlu0 %v2262_v0, %s2365_s15 }
 0xd07   : > { %v1158_v9 = vpop.permute.xlu1 %1157 }
 0xd08   : > { %v1162_v11 = vmul.f32 %v1158_v9, %v1152_v6 }
 0xd09   : > { %v1156_v13 = vpop.permute.xlu0 %1155 }
 0xd0a   : > { %v1166_v14 = vadd.f32 %v1164_v10, %v1162_v11  ;;  %v1161_v17 = vmul.f32 %v1156_v13, %v1151_v12 }
 0xd0c   : > { %v1165_v18 = vadd.f32 %v1163_v16, %v1161_v17  ;;  %v2744_v19 = vsel %vm1179_vm6, %v1166_v14, %v2705_v29  ;;  %v2003_v29 = vunpack.c.l.bf16 %v2017_v28  ;;  %v2018_v14 = vld [vmem:[%s2479_s17 + $0x30] sm:$0xff]  }
 0xd0d   : > { %1186 = vrot.lane.b32.xlu1 %v2744_v19, %s2365_s15  ;;  %v2008_v16 = vunpack.c.h.bf16 %v2018_v14  ;;  %v2007_v17 = vunpack.c.l.bf16 %v2018_v14 }
 0xd0e   : > { %v2749_v20 = vsel %vm1178_vm7, %v1165_v18, %v2710_v31 }
 0xd0f   : > { %1184 = vrot.lane.b32.xlu0 %v2749_v20, %s2365_s15  ;;  %v1367_v18 = vadd.f32 %v2008_v16, %v2554_v15  ;;  %v2300_v16 = vld [vmem:[%s2562_s7 + $0x8] sm:$0xff] }
 0xd10   : > { %vm1670_vm15 = vcmp.gt.s32.totalorder %v2300_v16, 7 }
 0xd7f   : > { %v1187_v21 = vpop.permute.xlu1 %1186 }
 0xd80   : > { %1946 = vst.msk [vmem:[%s2589_s18 + $0x48] sm:$0xff] %vm321_vm0, %v1187_v21 }
 0xd81   : > { %v1185_v22 = vpop.permute.xlu0 %1184 }
 0xd82   : > { %1945 = vst.msk [vmem:[%s2589_s18 + $0x40] sm:$0xff] %vm321_vm0, %v1185_v22  ;;  %2111 = vmatprep.mubr.msk.f32.mxu1 %vm321_vm0, %v1185_v22 }
 0xd83   : > { %2112 = vmatmul.mubr.msk.f32.vlgmr.msra.gmra.mxu1 %vm321_vm0, %v1187_v21 }
 0xd84   : > { %2124 = vmatpush3.msk.msra.mxu1 %vm358_vm1, %v2490_v1  ;;  %v2004_v1 = vunpack.c.h.bf16 %v2017_v28  ;;  %vm1336_vm1 = vcmp.gt.s32.totalorder %v2565_v27, 5 }
 0xd85   : > { %2125 = vmatprep.subr.mxu1 %v2495_v2  ;;  %v1338_v45 = vsel %vm1336_vm1, 1, %v2362_v7 }
 0xd86   : > { %2126 = vmatpush3.msra.mxu1 %v2495_v2  ;;  %v1200_v31 = vadd.f32 %v2004_v1, %v2554_v15  ;;  %v1199_v2 = vadd.f32 %v2003_v29, %v2554_v15 }
 0xd87   : > { %2127 = vmatprep.subr.mxu1 %v2511_v5 }
 0xd88   : > { %2128 = vmatpush3.msra.mxu1 %v2511_v5 }
 0xe43   : > { %v2113_v23 = vpop.f32.mrf.mxu1 }
 0xe44   : > { %v1295_v24 = vadd.f32 %v2113_v23, %v2544_v8  ;;  %v1281_v32 = vadd.f32 %v2113_v23, %v1200_v31 }
 0xe45   : > { %v1271_v25 = vpop.f32.mrf.mxu1 }
 0xe46   : > { %v1294_v26 = vadd.f32 %v1271_v25, %v2544_v8  ;;  %1300 = vrot.lane.b32.xlu1 %v1295_v24, %s2363_s8  ;;  %v1280_v33 = vadd.f32 %v1271_v25, %v1199_v2  ;;  %v1953_v5 = vmul.f32 -1.442695, %v1281_v32 }
 0xe48   : > { %1298 = vrot.lane.b32.xlu0 %v1294_v26, %s2363_s8  ;;  %v1952_v34 = vmul.f32 -1.442695, %v1280_v33  ;;  %2263 = vpow2.f32 %v1953_v5  ;;  %v1505_v33 = vsel %vm1503_vm11, 1, %v2362_v7  ;;  %v1504_v5 = vsel %vm1502_vm12, 1, %v2362_v7 }
 0xe4a   : > { %2265 = vpow2.f32 %v1952_v34 }
 0xe55   : > { %v2264_v35 = vpop.eup %2263 }
 0xe56   : > { %v1289_v37 = vadd.f32 1.0, %v2264_v35 }
 0xe57   : > { %v2266_v36 = vpop.eup %2265 }
 0xe58   : > { %v1288_v38 = vadd.f32 1.0, %v2266_v36  ;;  %2267 = vrcp.f32 %v1289_v37 }
 0xe5a   : > { %2269 = vrcp.f32 %v1288_v38 }
 0xe65   : > { %v2268_v39 = vpop.eup %2267 }
 0xe66   : > { %v1319_v55 = vsub.f32 1.0, %v2268_v39  ;;  %v1331_v57 = vmul.f32 %v2268_v39, %v2744_v19 }
 0xe67   : > { %v2270_v42 = vpop.eup %2269 }
 0xe68   : > { %v1318_v59 = vsub.f32 1.0, %v2270_v42  ;;  %v1330_v62 = vmul.f32 %v2270_v42, %v2749_v20 }
 0xeb8   : > { %v1301_v40 = vpop.permute.xlu1 %1300 }
 0xeb9   : > { %v1305_v41 = vmul.f32 %v2268_v39, %v1301_v40 }
 0xeba   : > { %v1299_v43 = vpop.permute.xlu0 %1298 }
 0xebb   : > { %v1304_v44 = vmul.f32 %v2270_v42, %v1299_v43  ;;  %1310 = vrot.lane.b32.xlu1 %v1305_v41, %s2361_s28 }
 0xebd   : > { %1308 = vrot.lane.b32.xlu0 %v1304_v44, %s2361_s28 }
 0xebf   : > { %1343 = vperm.xlu1 %2201, %v1338_v45  }
 0xec1   : > { %1340 = vperm.xlu0 %2202, %v1337_v46  }
 0xf2d   : > { %v1311_v47 = vpop.permute.xlu1 %1310 }
 0xf2e   : > { %v1315_v48 = vadd.f32 %v1311_v47, %v1200_v31 }
 0xf2f   : > { %v1309_v49 = vpop.permute.xlu0 %1308 }
 0xf30   : > { %2271 = vtanh.f32 %v1315_v48  ;;  %v1314_v50 = vadd.f32 %v1309_v49, %v1199_v2 }
 0xf32   : > { %2273 = vtanh.f32 %v1314_v50 }
 0xf3a   : > { %v1344_v53 = vpop.permute.xlu1 %1343 }
 0xf3b   : > { %vm1346_vm9 = vcmp.eq.s32.totalorder %v1344_v53, 1 }
 0xf3c   : > { %v1341_v54 = vpop.permute.xlu0 %1340 }
 0xf3d   : > { %v2272_v51 = vpop.eup %2271  ;;  %vm1345_vm10 = vcmp.eq.s32.totalorder %v1341_v54, 1 }
 0xf3e   : > { %1324 = vrot.lane.b32.xlu1 %v2272_v51, %s2365_s15 }
 0xf3f   : > { %v2274_v52 = vpop.eup %2273 }
 0xf40   : > { %1322 = vrot.lane.b32.xlu0 %v2274_v52, %s2365_s15 }
 0xfb0   : > { %v1325_v56 = vpop.permute.xlu1 %1324 }
 0xfb1   : > { %v1329_v58 = vmul.f32 %v1325_v56, %v1319_v55 }
 0xfb2   : > { %v1323_v60 = vpop.permute.xlu0 %1322 }
 0xfb3   : > { %v1333_v61 = vadd.f32 %v1331_v57, %v1329_v58  ;;  %v1328_v63 = vmul.f32 %v1323_v60, %v1318_v59  ;;  %v2019_v58 = vld [vmem:[%s2479_s17 + $0x38] sm:$0xff]   ;;  %s1980_s17 = sshll.u32 (%p2446_p9), %s2344_s21, 4 }
 0xfb4   : > { %v2012_v59 = vunpack.c.h.bf16 %v2019_v58  ;;  %v2011_v60 = vunpack.c.l.bf16 %v2019_v58 }
 0xfb5   : > { %v1332_v0 = vadd.f32 %v1330_v62, %v1328_v63  ;;  %v2783_v3 = vsel %vm1346_vm9, %v1333_v61, %v2744_v19  ;;  %v1366_v19 = vadd.f32 %v2007_v17, %v2554_v15  ;;  %v2299_v61 = vld [vmem:[%s2902_s3] ss:$0 sm:$0xff] }
 0xfb6   : > { %1353 = vrot.lane.b32.xlu1 %v2783_v3, %s2365_s15  ;;  %v1534_v62 = vadd.f32 %v2299_v61, %v2012_v59  ;;  %v1533_v63 = vadd.f32 %v2299_v61, %v2011_v60 }
 0xfb7   : > { %v2788_v4 = vsel %vm1345_vm10, %v1332_v0, %v2749_v20 }
 0xfb8   : > { %1351 = vrot.lane.b32.xlu0 %v2788_v4, %s2365_s15 }
0x1028   : > { %v1354_v6 = vpop.permute.xlu1 %1353 }
0x1029   : > { %1955 = vst.msk [vmem:[%s2589_s18 + $0x58] sm:$0xff] %vm321_vm0, %v1354_v6 }
0x102a   : > { %v1352_v9 = vpop.permute.xlu0 %1351 }
0x102b   : > { %1954 = vst.msk [vmem:[%s2589_s18 + $0x50] sm:$0xff] %vm321_vm0, %v1352_v9  ;;  %2120 = vmatprep.mubr.msk.f32.mxu0 %vm321_vm0, %v1352_v9 }
0x102c   : > { %2121 = vmatmul.mubr.msk.f32.vlgmr.msra.gmra.mxu0 %vm321_vm0, %v1354_v6 }
0x10ec   : > { %v2122_v10 = vpop.f32.mrf.mxu0 }
0x10ed   : > { %v1462_v11 = vadd.f32 %v2122_v10, %v2544_v8  ;;  %v1448_v20 = vadd.f32 %v2122_v10, %v1367_v18 }
0x10ee   : > { %v1438_v12 = vpop.f32.mrf.mxu0 }
0x10ef   : > { %v1461_v13 = vadd.f32 %v1438_v12, %v2544_v8  ;;  %1467 = vrot.lane.b32.xlu1 %v1462_v11, %s2363_s8  ;;  %v1447_v21 = vadd.f32 %v1438_v12, %v1366_v19  ;;  %v1962_v22 = vmul.f32 -1.442695, %v1448_v20  ;;  %v2301_v20 = vld [vmem:[%s2562_s7] sm:$0xff] }
0x10f0   : > { %vm1669_vm2 = vcmp.gt.s32.totalorder %v2301_v20, 7 }
0x10f1   : > { %1465 = vrot.lane.b32.xlu0 %v1461_v13, %s2363_s8  ;;  %v1961_v23 = vmul.f32 -1.442695, %v1447_v21  ;;  %2275 = vpow2.f32 %v1962_v22  ;;  %v1672_v21 = vsel %vm1670_vm15, 1, %v2362_v7  ;;  %v1671_v22 = vsel %vm1669_vm2, 1, %v2362_v7 }
0x10f3   : > { %2277 = vpow2.f32 %v1961_v23 }
0x10fe   : > { %v2276_v24 = vpop.eup %2275 }
0x10ff   : > { %v1456_v26 = vadd.f32 1.0, %v2276_v24 }
0x1100   : > { %v2278_v25 = vpop.eup %2277 }
0x1101   : > { %v1455_v28 = vadd.f32 1.0, %v2278_v25  ;;  %2279 = vrcp.f32 %v1456_v26 }
0x1103   : > { %2281 = vrcp.f32 %v1455_v28 }
0x110e   : > { %v2280_v1 = vpop.eup %2279 }
0x110f   : > { %v1486_v40 = vsub.f32 1.0, %v2280_v1  ;;  %v1498_v42 = vmul.f32 %v2280_v1, %v2783_v3 }
0x1110   : > { %v2282_v2 = vpop.eup %2281 }
0x1111   : > { %v1485_v44 = vsub.f32 1.0, %v2282_v2  ;;  %v1497_v47 = vmul.f32 %v2282_v2, %v2788_v4 }
0x1161   : > { %v1468_v29 = vpop.permute.xlu1 %1467 }
0x1162   : > { %v1472_v31 = vmul.f32 %v2280_v1, %v1468_v29 }
0x1163   : > { %v1466_v32 = vpop.permute.xlu0 %1465 }
0x1164   : > { %v1471_v15 = vmul.f32 %v2282_v2, %v1466_v32  ;;  %1477 = vrot.lane.b32.xlu1 %v1472_v31, %s2361_s28 }
0x1166   : > { %1475 = vrot.lane.b32.xlu0 %v1471_v15, %s2361_s28 }
0x1168   : > { %1510 = vperm.xlu1 %2201, %v1505_v33  }
0x116a   : > { %1507 = vperm.xlu0 %2202, %v1504_v5  }
0x11d6   : > { %v1478_v34 = vpop.permute.xlu1 %1477 }
0x11d7   : > { %v1482_v35 = vadd.f32 %v1478_v34, %v1367_v18 }
0x11d8   : > { %v1476_v36 = vpop.permute.xlu0 %1475 }
0x11d9   : > { %2283 = vtanh.f32 %v1482_v35  ;;  %v1481_v27 = vadd.f32 %v1476_v36, %v1366_v19 }
0x11db   : > { %2285 = vtanh.f32 %v1481_v27 }
0x11e3   : > { %v1511_v30 = vpop.permute.xlu1 %1510 }
0x11e4   : > { %vm1513_vm13 = vcmp.eq.s32.totalorder %v1511_v30, 1 }
0x11e5   : > { %v1508_v39 = vpop.permute.xlu0 %1507 }
0x11e6   : > { %v2284_v37 = vpop.eup %2283  ;;  %vm1512_vm14 = vcmp.eq.s32.totalorder %v1508_v39, 1 }
0x11e7   : > { %1491 = vrot.lane.b32.xlu1 %v2284_v37, %s2365_s15 }
0x11e8   : > { %v2286_v38 = vpop.eup %2285 }
0x11e9   : > { %1489 = vrot.lane.b32.xlu0 %v2286_v38, %s2365_s15 }
0x1259   : > { %v1492_v41 = vpop.permute.xlu1 %1491 }
0x125a   : > { %v1496_v43 = vmul.f32 %v1492_v41, %v1486_v40  ;;  %v1767_v40 = vld [vmem:[%s2589_s18] sm:$0xff] (%p2446_p9)  ;;  %v1769_v41 = vld [vmem:[%s2589_s18 + $0x8] sm:$0xff] (%p2446_p9) }
0x125b   : > { %v1490_v45 = vpop.permute.xlu0 %1489 }
0x125c   : > { %v1500_v46 = vadd.f32 %v1498_v42, %v1496_v43  ;;  %v1495_v48 = vmul.f32 %v1490_v45, %v1485_v44  ;;  %v1771_v42 = vld [vmem:[%s2589_s18 + $0x10] sm:$0xff] (%p2446_p9)  ;;  %v1773_v43 = vld [vmem:[%s2589_s18 + $0x18] sm:$0xff] (%p2446_p9)  ;;  %v1775_v44 = vld [vmem:[%s2589_s18 + $0x20] sm:$0xff] (%p2446_p9) }
0x125d   : > { %v1777_v45 = vld [vmem:[%s2589_s18 + $0x28] sm:$0xff] (%p2446_p9) }
0x125e   : > { %v1499_v49 = vadd.f32 %v1497_v47, %v1495_v48  ;;  %v2816_v50 = vsel %vm1513_vm13, %v1500_v46, %v2783_v3  ;;  %v1779_v46 = vld [vmem:[%s2589_s18 + $0x30] sm:$0xff] (%p2446_p9)  ;;  %v1781_v47 = vld [vmem:[%s2589_s18 + $0x38] sm:$0xff] (%p2446_p9)  ;;  %v1783_v48 = vld [vmem:[%s2589_s18 + $0x40] sm:$0xff] (%p2446_p9) }
0x125f   : > { %1520 = vrot.lane.b32.xlu1 %v2816_v50, %s2365_s15 }
0x1260   : > { %v2821_v51 = vsel %vm1512_vm14, %v1499_v49, %v2788_v4  ;;  %v1785_v49 = vld [vmem:[%s2589_s18 + $0x48] sm:$0xff] (%p2446_p9) }
0x1261   : > { %1518 = vrot.lane.b32.xlu0 %v2821_v51, %s2365_s15 }
0x12d1   : > { %v1521_v52 = vpop.permute.xlu1 %1520 }
0x12d2   : > { %1964 = vst.msk [vmem:[%s2589_s18 + $0x68] sm:$0xff] %vm321_vm0, %v1521_v52 }
0x12d3   : > { %v1519_v53 = vpop.permute.xlu0 %1518 }
0x12d4   : > { %1963 = vst.msk [vmem:[%s2589_s18 + $0x60] sm:$0xff] %vm321_vm0, %v1519_v53  ;;  %2129 = vmatprep.mubr.msk.f32.mxu1 %vm321_vm0, %v1519_v53 }
0x12d5   : > { %2130 = vmatmul.mubr.msk.f32.vlgmr.msra.gmra.mxu1 %vm321_vm0, %v1521_v52 }
0x12d9   : > { %v1793_v53 = vld [vmem:[%s2589_s18 + $0x68] sm:$0xff] (%p2446_p9) }
0x12db   : > { %v1791_v52 = vld [vmem:[%s2589_s18 + $0x60] sm:$0xff] (%p2446_p9) }
0x1395   : > { %v2131_v54 = vpop.f32.mrf.mxu1 }
0x1396   : > { %v1629_v55 = vadd.f32 %v2131_v54, %v2544_v8  ;;  %v1615_v0 = vadd.f32 %v2131_v54, %v1534_v62 }
0x1397   : > { %v1605_v56 = vpop.f32.mrf.mxu1 }
0x1398   : > { %v1628_v57 = vadd.f32 %v1605_v56, %v2544_v8  ;;  %1634 = vrot.lane.b32.xlu1 %v1629_v55, %s2363_s8  ;;  %v1614_v3 = vadd.f32 %v1605_v56, %v1533_v63  ;;  %v1971_v4 = vmul.f32 -1.442695, %v1615_v0 }
0x139a   : > { %1632 = vrot.lane.b32.xlu0 %v1628_v57, %s2363_s8  ;;  %v1970_v6 = vmul.f32 -1.442695, %v1614_v3  ;;  %2287 = vpow2.f32 %v1971_v4  ;;  %s1708_s8 = scalar_lea.vmem (%p2446_p9), %s2904_s5, %s1980_s17 }
0x139b   : > { %1768 = vst [vmem:[%s1708_s8] sm:$0xff] (%p2446_p9), %v1767_v40  ;;  %1770 = vst [vmem:[%s1708_s8 + $0x8] sm:$0xff] (%p2446_p9), %v1769_v41 }
0x139c   : > { %2289 = vpow2.f32 %v1970_v6  ;;  %1772 = vst [vmem:[%s1708_s8 + $0x20] sm:$0xff] (%p2446_p9), %v1771_v42  ;;  %1774 = vst [vmem:[%s1708_s8 + $0x28] sm:$0xff] (%p2446_p9), %v1773_v43 }
0x139d   : > { %1776 = vst [vmem:[%s1708_s8 + $0x40] sm:$0xff] (%p2446_p9), %v1775_v44  ;;  %1778 = vst [vmem:[%s1708_s8 + $0x48] sm:$0xff] (%p2446_p9), %v1777_v45 }
0x139e   : > { %1780 = vst [vmem:[%s1708_s8 + $0x60] sm:$0xff] (%p2446_p9), %v1779_v46  ;;  %1782 = vst [vmem:[%s1708_s8 + $0x68] sm:$0xff] (%p2446_p9), %v1781_v47 }
0x139f   : > { %1784 = vst [vmem:[%s1708_s8 + $0x80] sm:$0xff] (%p2446_p9), %v1783_v48  ;;  %1786 = vst [vmem:[%s1708_s8 + $0x88] sm:$0xff] (%p2446_p9), %v1785_v49 }
0x13a0   : > { %1792 = vst [vmem:[%s1708_s8 + $0xc0] sm:$0xff] (%p2446_p9), %v1791_v52  ;;  %1794 = vst [vmem:[%s1708_s8 + $0xc8] sm:$0xff] (%p2446_p9), %v1793_v53 }
0x13a7   : > { %v2288_v8 = vpop.eup %2287 }
0x13a8   : > { %v1623_v10 = vadd.f32 1.0, %v2288_v8 }
0x13a9   : > { %v2290_v9 = vpop.eup %2289 }
0x13aa   : > { %v1622_v11 = vadd.f32 1.0, %v2290_v9  ;;  %2291 = vrcp.f32 %v1623_v10 }
0x13ac   : > { %2293 = vrcp.f32 %v1622_v11 }
0x13b7   : > { %v2292_v12 = vpop.eup %2291 }
0x13b8   : > { %v1653_v2 = vsub.f32 1.0, %v2292_v12  ;;  %v1665_v7 = vmul.f32 %v2292_v12, %v2816_v50 }
0x13b9   : > { %v2294_v17 = vpop.eup %2293 }
0x13ba   : > { %v1652_v33 = vsub.f32 1.0, %v2294_v17  ;;  %v1664_v35 = vmul.f32 %v2294_v17, %v2821_v51 }
0x140a   : > { %v1635_v13 = vpop.permute.xlu1 %1634 }
0x140b   : > { %v1639_v14 = vmul.f32 %v2292_v12, %v1635_v13 }
0x140c   : > { %v1633_v18 = vpop.permute.xlu0 %1632 }
0x140d   : > { %v1638_v19 = vmul.f32 %v2294_v17, %v1633_v18  ;;  %1644 = vrot.lane.b32.xlu1 %v1639_v14, %s2361_s28 }
0x140f   : > { %1642 = vrot.lane.b32.xlu0 %v1638_v19, %s2361_s28 }
0x1411   : > { %1677 = vperm.xlu1 %2201, %v1672_v21  }
0x1413   : > { %1674 = vperm.xlu0 %2202, %v1671_v22  }
0x147f   : > { %v1645_v23 = vpop.permute.xlu1 %1644 }
0x1480   : > { %v1649_v24 = vadd.f32 %v1645_v23, %v1534_v62 }
0x1481   : > { %v1643_v25 = vpop.permute.xlu0 %1642 }
0x1482   : > { %2295 = vtanh.f32 %v1649_v24  ;;  %v1648_v26 = vadd.f32 %v1643_v25, %v1533_v63 }
0x1484   : > { %2297 = vtanh.f32 %v1648_v26 }
0x148c   : > { %v1678_v29 = vpop.permute.xlu1 %1677 }
0x148d   : > { %vm1680_vm3 = vcmp.eq.s32.totalorder %v1678_v29, 1 }
0x148e   : > { %v1675_v31 = vpop.permute.xlu0 %1674 }
0x148f   : > { %v2296_v28 = vpop.eup %2295  ;;  %vm1679_vm4 = vcmp.eq.s32.totalorder %v1675_v31, 1 }
0x1490   : > { %1658 = vrot.lane.b32.xlu1 %v2296_v28, %s2365_s15 }
0x1491   : > { %v2298_v1 = vpop.eup %2297 }
0x1492   : > { %1656 = vrot.lane.b32.xlu0 %v2298_v1, %s2365_s15 }
0x1502   : > { %v1659_v32 = vpop.permute.xlu1 %1658 }
0x1503   : > { %v1663_v15 = vmul.f32 %v1659_v32, %v1653_v2 }
0x1504   : > { %v1657_v5 = vpop.permute.xlu0 %1656 }
0x1505   : > { %v1667_v34 = vadd.f32 %v1665_v7, %v1663_v15  ;;  %v1662_v36 = vmul.f32 %v1657_v5, %v1652_v33 }
0x1507   : > { %v1666_v27 = vadd.f32 %v1664_v35, %v1662_v36  ;;  %v1682_v37 = vsel %vm1680_vm3, %v1667_v34, %v2816_v50  ;;  %v1787_v50 = vld [vmem:[%s2589_s18 + $0x50] sm:$0xff] (%p2446_p9) }
0x1508   : > { %1687 = vrot.lane.b32.xlu1 %v1682_v37, %s2365_s15  ;;  %1788 = vst [vmem:[%s1708_s8 + $0xa0] sm:$0xff] (%p2446_p9), %v1787_v50 }
0x1509   : > { %v1681_v38 = vsel %vm1679_vm4, %v1666_v27, %v2821_v51  ;;  %v1789_v51 = vld [vmem:[%s2589_s18 + $0x58] sm:$0xff] (%p2446_p9) }
0x150a   : > { %1685 = vrot.lane.b32.xlu0 %v1681_v38, %s2365_s15  ;;  %1790 = vst [vmem:[%s1708_s8 + $0xa8] sm:$0xff] (%p2446_p9), %v1789_v51 }
0x1579   : > { %1702 = sbr.rel (!%p2446_p9) target bundleno = 5510 (0x1586), region = 52 }
0x157a   : > { %v1688_v30 = vpop.permute.xlu1 %1687 }
0x157b   : > { %1973 = vst.msk [vmem:[%s2589_s18 + $0x78] sm:$0xff] %vm321_vm0, %v1688_v30  ;;  %1695 = vst.msk [vmem:[#allocation2 + $0x8] sm:$0xff] %vm321_vm0, %v1688_v30 }
0x157c   : > { %v1686_v39 = vpop.permute.xlu0 %1685 }
0x157d   : > { %1972 = vst.msk [vmem:[%s2589_s18 + $0x70] sm:$0xff] %vm321_vm0, %v1686_v39  ;;  %1694 = vst.msk [vmem:[#allocation2] sm:$0xff] %vm321_vm0, %v1686_v39 }
0x1582   : > { %v1797_v55 = vld [vmem:[%s2589_s18 + $0x78] sm:$0xff] }
0x1583   : > { %1798 = vst [vmem:[%s1708_s8 + $0xe8] sm:$0xff] %v1797_v55 }
0x1584   : > { %v1795_v54 = vld [vmem:[%s2589_s18 + $0x70] sm:$0xff] }
0x1585   : > { %1796 = vst [vmem:[%s1708_s8 + $0xe0] sm:$0xff] %v1795_v54 }
0x1586 PF: > { %s18_s23 = sadd.s32 1, %s2352_s23   ;;  %s2908_s18 = smov %s2336_s19 }
0x1587   : > { %p15_p1 = scmp.ge.s32.totalorder %s18_s23, 4   ;;  %s2909_s19 = smov %s2340_s20 }
0x1588   : > { %s2910_s20 = smov %s2444_s30  ;;  %s2911_s21 = smov %s2348_s22 }
0x1589   : > { %s2912_s22 = smov %s2914_s25  ;;  %17 = sbr.rel (!%p15_p1) target bundleno = 4 (0x4), region = 144 }
0x158e   :  { %1814 = vsyncpa [#allocation4], 1 }
0x158f   :  { %1816 = vsyncpa [#allocation4 + $0x1], 1 }

</bundles_post_ra>
